<compile_context>
chip_gen: v7x
topology: tpu7x:2x2x1
jax: 0.10.0
libtpu: 0.0.40
codegen_flags: <defaults>
</compile_context>

<pallas_src>
import functools

import jax
import jax.numpy as jnp
from jax import lax
from jax.experimental import pallas as pl
from jax.experimental.pallas import tpu as pltpu

_VMEM_LIMIT = 32 * 1024 * 1024   # explicit, safe on v5e / v6e / v7x


# ------------------------- tiled linear (matmul) ------------------------------
def _matmul_kernel(x_ref, w_ref, o_ref, acc_ref):
    @pl.when(pl.program_id(2) == 0)
    def _():
        acc_ref[...] = jnp.zeros_like(acc_ref)

    acc_ref[...] += jnp.dot(x_ref[...], w_ref[...],
                            preferred_element_type=jnp.float32)

    @pl.when(pl.program_id(2) == pl.num_programs(2) - 1)
    def _():
        o_ref[...] = acc_ref[...].astype(o_ref.dtype)


def linear(x, w_t, *, tm=256, tn=256, tk=512):
    """x: [M, K], w_t: [K, N] (nn.Linear weight pre-transposed)."""
    M, K = x.shape
    K2, N = w_t.shape
    assert K == K2
    tm, tn, tk = min(tm, M), min(tn, N), min(tk, K)
    assert M % tm == 0 and N % tn == 0 and K % tk == 0
    grid = (M // tm, N // tn, K // tk)
    return pl.pallas_call(
        _matmul_kernel,
        out_shape=jax.ShapeDtypeStruct((M, N), x.dtype),
        grid_spec=pltpu.PrefetchScalarGridSpec(
            num_scalar_prefetch=0,
            grid=grid,
            in_specs=[
                pl.BlockSpec((tm, tk), lambda i, j, k: (i, k)),
                pl.BlockSpec((tk, tn), lambda i, j, k: (k, j)),
            ],
            out_specs=pl.BlockSpec((tm, tn), lambda i, j, k: (i, j)),
            scratch_shapes=[pltpu.VMEM((tm, tn), jnp.float32)],
        ),
        compiler_params=pltpu.CompilerParams(
            dimension_semantics=("parallel", "parallel", "arbitrary"),
            vmem_limit_bytes=_VMEM_LIMIT,
        ),
    )(x, w_t)


# ------------------------------ RoPE kernel -----------------------------------
def _rope_kernel(x_ref, cos_ref, sin_ref, o_ref, *, half):
    x = x_ref[...].astype(jnp.float32)             # [bt, hd]
    cos = cos_ref[0]                               # [bt, hd] f32
    sin = sin_ref[0]
    lane = lax.broadcasted_iota(jnp.int32, x.shape, 1)
    sign = jnp.where(lane < half, -1.0, 1.0)
    # shift == hd/2, so roll direction is immaterial: rolled = [x_hi, x_lo]
    x_rot = pltpu.roll(x, shift=half, axis=1) * sign   # rotate_half(x)
    o_ref[...] = (x * cos + x_rot * sin).astype(o_ref.dtype)


def rope_qk(qkv, cos_t, sin_t, *, nh, nkv, hd, block_t=128):
    """Apply neox RoPE to the q and k column blocks of qkv.

    qkv:   [T, (nh + 2*nkv) * hd]
    cos_t: [2, T, hd]   plane 0 = q tables (pre-scaled by head_dim**-0.5),
                        plane 1 = k tables.
    Returns [T, (nh + nkv) * hd]  (roped q heads then roped k heads).
    """
    T = qkv.shape[0]
    bt = min(block_t, T)
    assert T % bt == 0
    n_rope_heads = nh + nkv
    kern = functools.partial(_rope_kernel, half=hd // 2)
    return pl.pallas_call(
        kern,
        out_shape=jax.ShapeDtypeStruct((T, n_rope_heads * hd), qkv.dtype),
        grid_spec=pltpu.PrefetchScalarGridSpec(
            num_scalar_prefetch=0,
            grid=(n_rope_heads, T // bt),
            in_specs=[
                pl.BlockSpec((bt, hd), lambda h, ti: (ti, h)),
                # plane 0 for q heads (h < nh), plane 1 for k heads
                pl.BlockSpec((1, bt, hd), lambda h, ti: (h // nh, ti, 0)),
                pl.BlockSpec((1, bt, hd), lambda h, ti: (h // nh, ti, 0)),
            ],
            out_specs=pl.BlockSpec((bt, hd), lambda h, ti: (ti, h)),
        ),
        compiler_params=pltpu.CompilerParams(
            dimension_semantics=("parallel", "parallel"),
            vmem_limit_bytes=_VMEM_LIMIT,
        ),
    )(qkv, cos_t, sin_t)


# ----------------------- causal GQA flash attention ---------------------------
def _flash_kernel(q_ref, k_ref, v_ref, o_ref, m_sc, l_sc, acc_sc):
    qi = pl.program_id(1)
    ki = pl.program_id(2)

    @pl.when(ki == 0)
    def _():
        m_sc[...] = jnp.full_like(m_sc, -jnp.inf)
        l_sc[...] = jnp.zeros_like(l_sc)
        acc_sc[...] = jnp.zeros_like(acc_sc)

    # causal block skipping: kv blocks strictly above the diagonal do no work
    @pl.when(ki <= qi)
    def _():
        q = q_ref[...]                       # [bq, hd]  roped & pre-scaled
        k = k_ref[...]                       # [bkv, hd] roped
        s = lax.dot_general(q, k, (((1,), (1,)), ((), ())),
                            preferred_element_type=jnp.float32)   # [bq, bkv]
        bq, bkv = s.shape
        row = lax.broadcasted_iota(jnp.int32, (bq, bkv), 0) + qi * bq
        col = lax.broadcasted_iota(jnp.int32, (bq, bkv), 1) + ki * bkv
        s = jnp.where(row >= col, s, -1e30)

        m_prev = m_sc[...]
        m_new = jnp.maximum(m_prev, jnp.max(s, axis=-1, keepdims=True))
        alpha = jnp.exp(m_prev - m_new)
        p = jnp.exp(s - m_new)
        l_sc[...] = alpha * l_sc[...] + jnp.sum(p, axis=-1, keepdims=True)
        acc_sc[...] = alpha * acc_sc[...] + jnp.dot(
            p.astype(v_ref.dtype), v_ref[...],
            preferred_element_type=jnp.float32)
        m_sc[...] = m_new

    @pl.when(ki == pl.num_programs(2) - 1)
    def _():
        # Exact normalization: runs once per (head, q-block), off the hot loop.
        o_ref[...] = (acc_sc[...] / l_sc[...]).astype(o_ref.dtype)


def causal_gqa_flash_attention(roped_qk, qkv, *, nh, nkv, hd, block=128):
    """roped_qk: [T, (nh+nkv)*hd] (roped, q pre-scaled); qkv: raw projection.

    Output: [T, nh*hd] lane-dense, ready for the Wo matmul (no transposes).
    """
    T = qkv.shape[0]
    assert nh % nkv == 0
    group = nh // nkv
    b = min(block, T)
    assert T % b == 0
    nblk = T // b
    grid = (nh, nblk, nblk)               # (head, q block, kv block) — red. last

    return pl.pallas_call(
        _flash_kernel,
        out_shape=jax.ShapeDtypeStruct((T, nh * hd), qkv.dtype),
        grid_spec=pltpu.PrefetchScalarGridSpec(
            num_scalar_prefetch=0,
            grid=grid,
            in_specs=[
                # q head h -> column block h of roped_qk (resident across kv)
                pl.BlockSpec((b, hd), lambda h, qi, ki: (qi, h)),
                # k head h//group -> column block nh + h//group of roped_qk.
                # kv index clamped to qi: skipped causal blocks re-use the
                # already-resident diagonal block, so they cost no DMA.
                pl.BlockSpec((b, hd),
                             lambda h, qi, ki: (jnp.minimum(ki, qi),
                                                nh + h // group)),
                # v head h//group -> column block nh + nkv + h//group of qkv
                pl.BlockSpec((b, hd),
                             lambda h, qi, ki: (jnp.minimum(ki, qi),
                                                nh + nkv + h // group)),
            ],
            out_specs=pl.BlockSpec((b, hd), lambda h, qi, ki: (qi, h)),
            scratch_shapes=[
                pltpu.VMEM((b, 1), jnp.float32),    # running max  m
                pltpu.VMEM((b, 1), jnp.float32),    # running sum  l
                pltpu.VMEM((b, hd), jnp.float32),   # output accumulator
            ],
        ),
        compiler_params=pltpu.CompilerParams(
            dimension_semantics=("parallel", "parallel", "arbitrary"),
            vmem_limit_bytes=_VMEM_LIMIT,
        ),
    )(roped_qk, roped_qk, qkv)


# ------------------------------- module glue ----------------------------------
def llama_attention_forward(hidden_states, params, cfg):
    T, H = hidden_states.shape
    nh, nkv, hd = cfg["num_heads"], cfg["num_kv_heads"], cfg["head_dim"]
    assert nh % nkv == 0 and nkv <= nh

    # 1) qkv projection (tiled Pallas matmul)
    qkv = linear(hidden_states, params["wqkv"].T)         # [T, (nh+2*nkv)*hd]

    # 2) RoPE tables (neox style: halves tiled); softmax scale folded into the
    #    q tables so the attention kernel never multiplies by it.
    pos = jnp.arange(T, dtype=jnp.float32)
    inv_freq = cfg["rope_theta"] ** (
        -jnp.arange(0, hd, 2, dtype=jnp.float32) / hd)
    ang = pos[:, None] * inv_freq[None, :]                           # [T, hd/2]
    cos = jnp.concatenate([jnp.cos(ang), jnp.cos(ang)], axis=-1)     # [T, hd]
    sin = jnp.concatenate([jnp.sin(ang), jnp.sin(ang)], axis=-1)
    scale = float(hd) ** -0.5
    cos_t = jnp.stack([cos * scale, cos]).astype(jnp.float32)        # [2, T, hd]
    sin_t = jnp.stack([sin * scale, sin]).astype(jnp.float32)

    roped_qk = rope_qk(qkv, cos_t, sin_t, nh=nh, nkv=nkv, hd=hd)

    # 3) causal GQA flash attention -> lane-dense [T, nh*hd]
    attn = causal_gqa_flash_attention(roped_qk, qkv, nh=nh, nkv=nkv, hd=hd)

    # 4) output projection (tiled Pallas matmul)
    return linear(attn, params["wo"].T)                               # [T, H]


# ------------------------------ reference (jnp) --------------------------------
def _reference(hidden_states, params, cfg):
    """Pure-jnp reference at Precision.HIGHEST (near-exact f32)."""
    HI = lax.Precision.HIGHEST
    T, H = hidden_states.shape
    nh, nkv, hd = cfg["num_heads"], cfg["num_kv_heads"], cfg["head_dim"]
    q_size, kv_size = nh * hd, nkv * hd
    qkv = jnp.dot(hidden_states, params["wqkv"].T, precision=HI)
    q = qkv[:, :q_size].reshape(T, nh, hd)
    k = qkv[:, q_size:q_size + kv_size].reshape(T, nkv, hd)
    v = qkv[:, q_size + kv_size:].reshape(T, nkv, hd)

    pos = jnp.arange(T, dtype=jnp.float32)
    inv_freq = cfg["rope_theta"] ** (-jnp.arange(0, hd, 2, dtype=jnp.float32) / hd)
    ang = pos[:, None] * inv_freq[None, :]
    cos = jnp.concatenate([jnp.cos(ang), jnp.cos(ang)], -1)[:, None, :]
    sin = jnp.concatenate([jnp.sin(ang), jnp.sin(ang)], -1)[:, None, :]

    def rot_half(x):
        return jnp.concatenate([-x[..., hd // 2:], x[..., :hd // 2]], -1)

    q = q * cos + rot_half(q) * sin
    k = k * cos + rot_half(k) * sin

    group = nh // nkv
    k = jnp.repeat(k, group, axis=1)
    v = jnp.repeat(v, group, axis=1)
    s = jnp.einsum("qhd,khd->hqk", q, k, precision=HI) * (hd ** -0.5)
    mask = jnp.tril(jnp.ones((T, T), bool))
    s = jnp.where(mask[None], s, -jnp.inf)
    p = jax.nn.softmax(s, axis=-1)
    o = jnp.einsum("hqk,khd->qhd", p, v, precision=HI).reshape(T, nh * hd)
    return jnp.dot(o, params["wo"].T, precision=HI)


# ---------------------------------- main ---------------------------------------
if __name__ == "__main__":
    cfg = dict(
        hidden_size=512,
        num_heads=4,
        num_kv_heads=2,
        head_dim=128,          # = hidden_size // num_heads (128-lane aligned)
        rope_theta=10000.0,
    )
    T = 256
    H = cfg["hidden_size"]
    qkv_out = (cfg["num_heads"] + 2 * cfg["num_kv_heads"]) * cfg["head_dim"]

    key = jax.random.PRNGKey(0)
    k1, k2, k3 = jax.random.split(key, 3)
    params = {
        # nn.Linear weight layout: [out_features, in_features]
        "wqkv": jax.random.normal(k1, (qkv_out, H), jnp.float32) * 0.05,
        "wo": jax.random.normal(
            k2, (H, cfg["num_heads"] * cfg["head_dim"]), jnp.float32) * 0.05,
    }
    hidden_states = jax.random.normal(k3, (T, H), jnp.float32)

    out = llama_attention_forward(hidden_states, params, cfg)
    out = jax.block_until_ready(out)

    ref = _reference(hidden_states, params, cfg)
    assert out.shape == (T, H)
    # Tolerance covers MXU bf16-pass accumulation differences between the
    # Pallas matmuls and the HIGHEST-precision jnp reference (observed max
    # abs err on this config is well under 1e-2).
    err = float(jnp.max(jnp.abs(out - ref)))
    assert jnp.allclose(out, ref, atol=2e-2, rtol=2e-2), f"mismatch: {err}"
    print("KERNEL_OK")
</pallas_src>

<mosaic_0001>
module attributes {stable_mosaic.version = 11 : i64} {
  func.func @_matmul_kernel(%arg0: i32, %arg1: i32, %arg2: i32, %arg3: memref<256x512xf32, #tpu.memory_space<vmem>>, %arg4: memref<512x256xf32, #tpu.memory_space<vmem>>, %arg5: memref<256x256xf32, #tpu.memory_space<vmem>>, %arg6: memref<256x256xf32, #tpu.memory_space<vmem>>) attributes {dimension_semantics = [#tpu.dimension_semantics<parallel>, #tpu.dimension_semantics<parallel>, #tpu.dimension_semantics<arbitrary>], iteration_bounds = array<i64: 1, 4, 1>, scalar_prefetch = 0 : i64, scratch_operands = 1 : i64, tpu.core_type = #tpu.core_type<tc>, window_params = [{transform_indices = @transform_0, window_bounds = array<i64: 256, 512>}, {transform_indices = @transform_1, window_bounds = array<i64: 512, 256>}, {transform_indices = @transform_2, window_bounds = array<i64: 256, 256>}]} {
    %c0_i32 = arith.constant 0 : i32
    %0 = arith.cmpi eq, %arg2, %c0_i32 : i32
    %1 = arith.extui %0 : i1 to i32
    %c0_i32_0 = arith.constant 0 : i32
    %2 = arith.cmpi ne, %1, %c0_i32_0 : i32
    scf.if %2 {
      %cst_10 = arith.constant 0.000000e+00 : f32
      %12 = vector.broadcast %cst_10 : f32 to vector<256x256xf32>
      %c0_11 = arith.constant 0 : index
      %c0_12 = arith.constant 0 : index
      %13 = vector.load %arg6[%c0_11, %c0_12] : memref<256x256xf32, #tpu.memory_space<vmem>>, vector<256x256xf32>
      tpu.vector_store %arg6[%c0_11, %c0_12], %12 {strides = array<i32>} : memref<256x256xf32, #tpu.memory_space<vmem>>, vector<256x256xf32>,
    } else {
    }
    %c0 = arith.constant 0 : index
    %c0_1 = arith.constant 0 : index
    %3 = vector.load %arg6[%c0, %c0_1] : memref<256x256xf32, #tpu.memory_space<vmem>>, vector<256x256xf32>
    %c0_2 = arith.constant 0 : index
    %c0_3 = arith.constant 0 : index
    %4 = vector.load %arg3[%c0_2, %c0_3] : memref<256x512xf32, #tpu.memory_space<vmem>>, vector<256x512xf32>
    %c0_4 = arith.constant 0 : index
    %c0_5 = arith.constant 0 : index
    %5 = vector.load %arg4[%c0_4, %c0_5] : memref<512x256xf32, #tpu.memory_space<vmem>>, vector<512x256xf32>
    %cst = arith.constant dense<0.000000e+00> : vector<256x256xf32>
    %6 = tpu.matmul %4, %5, %cst {dimension_numbers = #tpu.dot_dimension_numbers<[1], [0], [0], [1], [0, 0, 1, 1], [], []>} : vector<256x512xf32>, vector<512x256xf32>, vector<256x256xf32> -> vector<256x256xf32>
    %7 = arith.addf %3, %6 : vector<256x256xf32>
    %c0_6 = arith.constant 0 : index
    %c0_7 = arith.constant 0 : index
    %8 = vector.load %arg6[%c0_6, %c0_7] : memref<256x256xf32, #tpu.memory_space<vmem>>, vector<256x256xf32>
    tpu.vector_store %arg6[%c0_6, %c0_7], %7 {strides = array<i32>} : memref<256x256xf32, #tpu.memory_space<vmem>>, vector<256x256xf32>,
    %c0_i32_8 = arith.constant 0 : i32
    %9 = arith.cmpi eq, %arg2, %c0_i32_8 : i32
    %10 = arith.extui %9 : i1 to i32
    %c0_i32_9 = arith.constant 0 : i32
    %11 = arith.cmpi ne, %10, %c0_i32_9 : i32
    scf.if %11 {
      %c0_10 = arith.constant 0 : index
      %c0_11 = arith.constant 0 : index
      %12 = vector.load %arg6[%c0_10, %c0_11] : memref<256x256xf32, #tpu.memory_space<vmem>>, vector<256x256xf32>
      %c0_12 = arith.constant 0 : index
      %c0_13 = arith.constant 0 : index
      %13 = vector.load %arg5[%c0_12, %c0_13] : memref<256x256xf32, #tpu.memory_space<vmem>>, vector<256x256xf32>
      tpu.vector_store %arg5[%c0_12, %c0_13], %12 {strides = array<i32>} : memref<256x256xf32, #tpu.memory_space<vmem>>, vector<256x256xf32>,
    } else {
    }
    return
  }
  func.func @transform_0(%arg0: i32, %arg1: i32, %arg2: i32) -> (i32, i32) {
    %c0_i32 = arith.constant 0 : i32
    return %arg0, %arg2 : i32, i32
  }
  func.func @transform_1(%arg0: i32, %arg1: i32, %arg2: i32) -> (i32, i32) {
    %c0_i32 = arith.constant 0 : i32
    return %arg2, %arg1 : i32, i32
  }
  func.func @transform_2(%arg0: i32, %arg1: i32, %arg2: i32) -> (i32, i32) {
    %c0_i32 = arith.constant 0 : i32
    return %arg0, %arg1 : i32, i32
  }
}

</mosaic_0001>

<bundles_post_ra>
// kernel: tpu_custom_call.1
= control target key start
LH: loop header
LB: loop body
LE: loop exit
PB: predicated region body
PF: predicated region fallthrough
CT: control target
= control target key end

     0   :  { %7 = vsyncpa [#allocation4], 0  ;;  %s2380_s0 = inlined_call_operand.hbm [shape: f32[256,512], index: 0, kind: input, shape index: {}]   ;;  %s2381_s1 = inlined_call_operand.hbm [shape: f32[512,1024], index: 1, kind: input, shape index: {}]   ;;  %s2382_s2 = inlined_call_operand.hbm [shape: f32[256,1024], index: 2, kind: output, shape index: {}]  }
   0x1   :  { %8 = vsyncpa [#allocation7], 0 }
   0x2   :  { %10 = vsyncpa [#allocation7 + $0x1], 0 }
   0x3   :  { %11 = vsyncpa [#allocation5], 0 }
   0x4   :  { %13 = vsyncpa [#allocation5 + $0x1], 0  ;;  %s1971_s9 = smov 0   ;;  %s1973_s10 = smov 0  }
   0x5   :  { %s1975_s11 = smov 0   ;;  %s1977_s12 = smov 0  }
   0x6   :  { %s1979_s13 = smov 0   ;;  %s1981_s14 = smov 0  }
   0x7 LB: > { %s1507_s15 = sadd.s32 4294967295, %s1943_s14   ;;  %s1508_s16 = sadd.s32 4294967294, %s1943_s14   ;;  %s1943_s14 = sphi %s1981_s14, %s19_s14   ;;  %s1939_s13 = sphi %s1979_s13, %s2407_s13   ;;  %s1935_s12 = sphi %s1977_s12, %s2406_s12   ;;  %s1931_s11 = sphi %s1975_s11, %s2405_s11   ;;  %s1927_s10 = sphi %s1973_s10, %s2404_s10   ;;  %s1923_s9 = sphi %s1971_s9, %s2403_s9  }
   0x8   : > { %p82_p0 = scmp.ne.s32.totalorder %s1931_s11, %s1927_s10  ;;  %p83_p1 = scmp.eq.s32.totalorder %s1943_s14, 0 }
   0x9   : > { %p88_p2 = scmp.ne.s32.totalorder %s1927_s10, %s1923_s9  ;;  %p2008_p3 = scmp.eq.s32.totalorder %s1507_s15, 0 }
   0xa   : > { %p2012_p4 = por %p83_p1, %p82_p0  ;;  %p114_p5 = scmp.eq.s32.totalorder %s1507_s15, 3 }
   0xb   : > { %s2389_s17 = scalar_select %p2008_p3, 1, 0 }
   0xc   : > { %p2018_p6 = por %p2008_p3, %p88_p2  ;;  %p120_p7 = scmp.eq.s32.totalorder %s1508_s16, 3 }
   0xd   : > { %p2022_p8 = por %p114_p5, %p82_p0  ;;  %p1509_p9 = scmp.ge.s32.totalorder %s1943_s14, 1 }
   0xe   : > { %s2391_s19 = scalar_select %p2018_p6, 1, 0 }
   0xf   : > { %s2392_s20 = scalar_select %p2022_p8, 1, 0 }
  0x10   : > { %p2027_p10 = por %p120_p7, %p88_p2  ;;  %p127_p11 = scmp.lt.s32.totalorder %s1943_s14, 5 }
  0x11   : > { %s1945_s23 = smov [#allocation3]   ;;  %p1739_p0 = scmp.lt.s32.totalorder %s1943_s14, 4 }
  0x12   : > { %s2393_s21 = scalar_select %p2027_p10, 1, 0 }
  0x13   : > { %p2032_p12 = pnand %p1509_p9, %p127_p11  ;;  %s145_s24 = sshll.u32 %s1945_s23, 4  ;;  %s146_s24 = int_to_ptr.vmem [resolvable:$true] %s145_s24 }
  0x14   : > { %p2047_p2 = pnand %p1739_p0, %p2012_p4  ;;  %s34_s27 = sadd.s32 1, %s1939_s13 }
  0x15   : > { %s2394_s22 = scalar_select %p2032_p12, 1, 0 }
  0x16   : > { %p1726_p13 = pneg %p2032_p12  ;;  %s1799_s30 = scalar_lea.hbm %s2380_s0, 16384 }
  0x17   : > { %s2396_s26 = scalar_select %p2047_p2, 1, 0 }
  0x18   : > { %p2041_p1 = pnand %p1726_p13, %p2008_p3  ;;  %p1800_p5 = scmp.ne.s32.totalorder %s2380_s0, %s1799_s30 }
  0x19   : > { %p1806_p4 = scmp.lt.u32.totalorder %s1799_s30, %s2380_s0 }
  0x1a   : > { %p1801_p7 = pneg %p2041_p1 }
  0x1c   : > { %p1802_p9 = pnand %p1801_p7, %p1800_p5 }
  0x1e   : > { %p1803_p11 = pneg %p1802_p9 }
  0x20   : > { %p1808_p13 = pnand %p1806_p4, %p1803_p11 }
  0x22   : > { %1811 = shalt.err (!%p1808_p13)
}
  0x23   : > { %s1812_s7 = scalar_lea.vmem %s146_s24, 16384  ;;  %p1820_p6 = scmp.lt.s32.totalorder %s146_s24, %s146_s24 }
  0x24   : > { %p1813_p0 = scmp.ne.s32.totalorder %s146_s24, %s1812_s7  ;;  %p1821_p3 = scmp.lt.s32.totalorder %s1812_s7, %s1812_s7 }
  0x26   : > { %p1815_p10 = pnand %p1813_p0, %p1801_p7  ;;  %p1822_p12 = por %p1821_p3, %p1820_p6 }
  0x28   : > { %p1816_p8 = pneg %p1815_p10 }
  0x2a   : > { %p1823_p2 = pnand %p1822_p12, %p1816_p8 }
  0x2c   : > { %1826 = shalt.err (!%p1823_p2)
}
  0x2d   : > { %s1946_s8 = smov 512   ;;  %s1947_s15 = smov 32  }
  0x2e   : > { %1729 = dma.hbm_to_vmem [thread:$0]  (!%p2041_p1), %s2380_s0, 16384, %s146_s24, [#allocation4], %s1946_s8, %s1946_s8, %s1947_s15  }
  0x2f   : > { %p36_p5 = scmp.ge.s32.totalorder %s34_s27, 4  ;;  %s75_s23 = sadd.s32 1, %s1931_s11 }
  0x30   : > { %s159_s28 = sand.u32 1, %s1931_s11   ;;  %s1524_s3 = sshll.u32 %s1939_s13, 8 }
  0x31   : > { %s2409_s27 = smov (%p36_p5, %s34_s27), 0  ;;  %s1512_s29 = sshll.u32 %s159_s28, 10 }
  0x32   : > { %s71_s30 = ssub.s32 %s1939_s13, %s2409_s27  ;;  %s2078_s25 = scalar_lea.hbm %s2381_s1, %s1524_s3 }
  0x33   : > { %p73_p3 = scmp.eq.s32.totalorder %s71_s30, 0  ;;  %s163_s24 = scalar_lea.vmem [#allocation6], %s1512_s29 }
  0x34   : > { %s173_s6 = sshll.u32 %s163_s24, 4  ;;  %s2085_s8 = scalar_lea.sflag [#allocation7], %s159_s28  ;;  %s2083_s6 = int_to_ptr.vmem [resolvable:$true] %s173_s6 }
  0x35   : > { %s2081_s7 = scalar_select %p73_p3, %s1931_s11, %s75_s23  }
  0x36   : > { %s1827_s15 = scalar_lea.hbm %s2078_s25, 16384  ;;  %p2397_p8 = scmp.ne.s32.totalorder %s2396_s26, 0 }
  0x37   : > { %p1828_p6 = scmp.ne.s32.totalorder %s2078_s25, %s1827_s15  ;;  %s1832_s30 = scalar_lea.hbm %s2381_s1, 65536 }
  0x38   : > { %p1829_p10 = pneg %p2397_p8  ;;  %p1833_p2 = scmp.lt.u32.totalorder %s2078_s25, %s2381_s1 }
  0x39   : > { %p1834_p7 = scmp.lt.u32.totalorder %s1832_s30, %s1827_s15  ;;  %p1836_p11 = scmp.lt.u32.totalorder %s1827_s15, %s2078_s25 }
  0x3a   : > { %p1830_p12 = pnand %p1829_p10, %p1828_p6 }
  0x3b   : > { %p1835_p9 = por %p1834_p7, %p1833_p2 }
  0x3c   : > { %p1831_p1 = pneg %p1830_p12 }
  0x3d   : > { %p1837_p4 = por %p1836_p11, %p1835_p9 }
  0x3f   : > { %p1838_p13 = pnand %p1837_p4, %p1831_p1 }
  0x41   : > { %1841 = shalt.err (!%p1838_p13)
}
  0x42   : > { %s1842_s23 = scalar_lea.vmem %s2083_s6, 16384  ;;  %s1948_s28 = smov [#allocation6]  }
  0x43   : > { %p1843_p0 = scmp.ne.s32.totalorder %s2083_s6, %s1842_s23  ;;  %s1847_s4 = sshll.u32 %s1948_s28, 4  ;;  %s1848_s4 = int_to_ptr.vmem [resolvable:$false] %s1847_s4 }
  0x44   : > { %s1849_s5 = scalar_lea.vmem %s1848_s4, 32768  ;;  %p1850_p6 = scmp.lt.s32.totalorder %s2083_s6, %s1848_s4 }
  0x45   : > { %p1845_p5 = pnand %p1843_p0, %p1829_p10  ;;  %p1851_p12 = scmp.lt.s32.totalorder %s1849_s5, %s1842_s23 }
  0x47   : > { %p1846_p3 = pneg %p1845_p5  ;;  %p1852_p2 = por %p1851_p12, %p1850_p6 }
  0x49   : > { %p1853_p7 = pnand %p1852_p2, %p1846_p3 }
  0x4b   : > { %1856 = shalt.err (!%p1853_p7)
}
  0x4c   : > { %s1949_s24 = smov 1024   ;;  %s1950_s15 = smov 256  }
  0x4d   : > { %s1951_s16 = smov 16   ;;  %p2398_p10 = scmp.ne.s32.totalorder %s2394_s22, 0 }
  0x4e   : > { %1733 = dma.hbm_to_vmem [thread:$0]  (!%p2397_p8), %s2078_s25, 16384, %s2083_s6, %s2085_s8, %s1949_s24, %s1950_s15, %s1951_s16  }
  0x4f   : > { %185 = sbr.rel (%p2398_p10) target bundleno = 515 (0x203), region = 28  ;;  %p2399_p1 = scmp.ne.s32.totalorder (!%p2398_p10), %s2389_s17, 0 }
  0x56   : > { %1910 = dma.done.wait (%p2399_p1), [#allocation4], 16384  }
  0x57   : > { %1912 = vsyncadd (%p2399_p1), [#allocation4], 4294950912  ;;  %s2120_s18 = sand.u32 1, %s1927_s10   ;;  %p2400_p8 = scmp.ne.s32.totalorder %s2391_s19, 0 }
  0x58   : > { %s1517_s30 = sshll.u32 %s2120_s18, 10  ;;  %s192_s29 = scalar_lea.sflag [#allocation7], %s2120_s18 }
  0x59   : > { %s2124_s3 = scalar_lea.vmem [#allocation6], %s1517_s30 }
  0x5a   : > { %1914 = dma.done.wait (%p2400_p8), %s192_s29, 16384  }
  0x5b   : > { %1916 = vsyncadd (%p2400_p8), %s192_s29, 4294950912  ;;  %v483_v0 = vld [vmem:[%s2124_s3 + $0x8] sm:$0xff]  ;;  %v485_v1 = vld [vmem:[%s2124_s3 + $0x18] sm:$0xff]  ;;  %s1518_s17 = sshll.u32 %s2120_s18, 9  ;;  %s1525_s22 = sshll.u32 %s1935_s12, 8 }
  0x5c   : > { %v547_v2 = vld [vmem:[%s2124_s3 + $0x208] sm:$0xff]  ;;  %v1526_v3 = vpack.c.bf16 %v485_v1, %v483_v0  ;;  %v549_v4 = vld [vmem:[%s2124_s3 + $0x218] sm:$0xff]  ;;  %v482_v5 = vld [vmem:[%s2124_s3] sm:$0xff]  ;;  %s2259_s19 = scalar_lea.vmem [#allocation8], %s1518_s17  ;;  %s2328_s8 = scalar_lea.hbm %s2382_s2, %s1525_s22 }
  0x5d   : > { %v484_v6 = vld [vmem:[%s2124_s3 + $0x10] sm:$0xff]  ;;  %v1590_v7 = vpack.c.bf16 %v549_v4, %v547_v2  ;;  %v546_v9 = vld [vmem:[%s2124_s3 + $0x200] sm:$0xff]  ;;  %v487_v11 = vld [vmem:[%s2124_s3 + $0x28] sm:$0xff]  ;;  %s1400_s26 = sshll.u32 %s2259_s19, 4  ;;  %s1384_s12 = scalar_lea.sflag [#allocation5], %s2120_s18  ;;  %s2330_s26 = int_to_ptr.vmem [resolvable:$true] %s1400_s26 }
  0x5e   : > { %v1528_v8 = vpack.c.bf16 %v484_v6, %v482_v5  ;;  %v548_v10 = vld [vmem:[%s2124_s3 + $0x210] sm:$0xff]  ;;  %1527 = vmatprep.subr.bf16.mxu1 %v1526_v3  ;;  %v489_v13 = vld [vmem:[%s2124_s3 + $0x38] sm:$0xff]  ;;  %v551_v14 = vld [vmem:[%s2124_s3 + $0x228] sm:$0xff]  ;;  %s1857_s23 = scalar_lea.vmem %s2330_s26, 8192  ;;  %p2401_p11 = scmp.ne.s32.totalorder %s2392_s20, 0 }
  0x5f   : > { %v1592_v12 = vpack.c.bf16 %v548_v10, %v546_v9  ;;  %v553_v15 = vld [vmem:[%s2124_s3 + $0x238] sm:$0xff]  ;;  %1591 = vmatprep.subr.bf16.mxu0 %v1590_v7  ;;  %v1530_v16 = vpack.c.bf16 %v489_v13, %v487_v11  ;;  %v486_v18 = vld [vmem:[%s2124_s3 + $0x20] sm:$0xff]  ;;  %v488_v19 = vld [vmem:[%s2124_s3 + $0x30] sm:$0xff]  ;;  %p1858_p9 = scmp.ne.s32.totalorder %s2330_s26, %s1857_s23  ;;  %s1952_s28 = smov [#allocation8]  }
  0x60   : > { %1529 = vmatpush1.bf16.msra.mxu1 %v1528_v8  ;;  %v1594_v17 = vpack.c.bf16 %v553_v15, %v551_v14  ;;  %v550_v20 = vld [vmem:[%s2124_s3 + $0x220] sm:$0xff]  ;;  %v1532_v21 = vpack.c.bf16 %v488_v19, %v486_v18  ;;  %v552_v22 = vld [vmem:[%s2124_s3 + $0x230] sm:$0xff]  ;;  %v491_v23 = vld [vmem:[%s2124_s3 + $0x48] sm:$0xff]  ;;  %s1861_s4 = sshll.u32 %s1952_s28, 4  ;;  %s1862_s4 = int_to_ptr.vmem [resolvable:$false] %s1861_s4 }
  0x61   : > { %1593 = vmatpush1.bf16.msra.mxu0 %v1592_v12  ;;  %v493_v24 = vld [vmem:[%s2124_s3 + $0x58] sm:$0xff]  ;;  %1531 = vmatprep.subr.bf16.mxu1 %v1530_v16  ;;  %v1596_v25 = vpack.c.bf16 %v552_v22, %v550_v20  ;;  %v555_v27 = vld [vmem:[%s2124_s3 + $0x248] sm:$0xff]  ;;  %v490_v29 = vld [vmem:[%s2124_s3 + $0x40] sm:$0xff]  ;;  %p1859_p4 = pnand %p1858_p9, %p2401_p11  ;;  %s1863_s5 = scalar_lea.vmem %s1862_s4, 16384 }
  0x62   : > { %1595 = vmatprep.subr.bf16.mxu0 %v1594_v17  ;;  %v1534_v26 = vpack.c.bf16 %v493_v24, %v491_v23  ;;  %v557_v28 = vld [vmem:[%s2124_s3 + $0x258] sm:$0xff]  ;;  %v492_v31 = vld [vmem:[%s2124_s3 + $0x50] sm:$0xff]  ;;  %v554_v32 = vld [vmem:[%s2124_s3 + $0x240] sm:$0xff]  ;;  %p1864_p0 = scmp.lt.s32.totalorder %s2330_s26, %s1862_s4  ;;  %p1865_p5 = scmp.lt.s32.totalorder %s1863_s5, %s1857_s23 }
  0x63   : > { %v1598_v30 = vpack.c.bf16 %v557_v28, %v555_v27  ;;  %v556_v33 = vld [vmem:[%s2124_s3 + $0x250] sm:$0xff]  ;;  %v1536_v34 = vpack.c.bf16 %v492_v31, %v490_v29  ;;  %v495_v35 = vld [vmem:[%s2124_s3 + $0x68] sm:$0xff]  ;;  %v497_v36 = vld [vmem:[%s2124_s3 + $0x78] sm:$0xff]  ;;  %p1860_p13 = pneg %p1859_p4 }
  0x64   : > { %1533 = vmatpush1.bf16.msra.mxu1 %v1532_v21  ;;  %v559_v37 = vld [vmem:[%s2124_s3 + $0x268] sm:$0xff]  ;;  %v1600_v38 = vpack.c.bf16 %v556_v33, %v554_v32  ;;  %v1538_v39 = vpack.c.bf16 %v497_v36, %v495_v35  ;;  %v561_v40 = vld [vmem:[%s2124_s3 + $0x278] sm:$0xff]  ;;  %v494_v41 = vld [vmem:[%s2124_s3 + $0x60] sm:$0xff]  ;;  %p1866_p3 = por %p1865_p5, %p1864_p0 }
  0x65   : > { %1597 = vmatpush1.bf16.msra.mxu0 %v1596_v25  ;;  %1535 = vmatprep.subr.bf16.mxu1 %v1534_v26  ;;  %v496_v42 = vld [vmem:[%s2124_s3 + $0x70] sm:$0xff]  ;;  %v1602_v43 = vpack.c.bf16 %v561_v40, %v559_v37  ;;  %v558_v44 = vld [vmem:[%s2124_s3 + $0x260] sm:$0xff]  ;;  %v499_v46 = vld [vmem:[%s2124_s3 + $0x88] sm:$0xff] }
  0x66   : > { %1599 = vmatprep.subr.bf16.mxu0 %v1598_v30  ;;  %v560_v45 = vld [vmem:[%s2124_s3 + $0x270] sm:$0xff]  ;;  %v501_v47 = vld [vmem:[%s2124_s3 + $0x98] sm:$0xff]  ;;  %v563_v48 = vld [vmem:[%s2124_s3 + $0x288] sm:$0xff]  ;;  %v1540_v50 = vpack.c.bf16 %v496_v42, %v494_v41  ;;  %p1867_p6 = pnand %p1866_p3, %p1860_p13 }
  0x67   : > { %v565_v49 = vld [vmem:[%s2124_s3 + $0x298] sm:$0xff]  ;;  %v1604_v51 = vpack.c.bf16 %v560_v45, %v558_v44  ;;  %v1542_v52 = vpack.c.bf16 %v501_v47, %v499_v46  ;;  %v498_v53 = vld [vmem:[%s2124_s3 + $0x80] sm:$0xff]  ;;  %v500_v54 = vld [vmem:[%s2124_s3 + $0x90] sm:$0xff] }
  0x68   : > { %1537 = vmatpush1.bf16.msra.mxu1 %v1536_v34  ;;  %v562_v55 = vld [vmem:[%s2124_s3 + $0x280] sm:$0xff]  ;;  %v1606_v56 = vpack.c.bf16 %v565_v49, %v563_v48  ;;  %v564_v57 = vld [vmem:[%s2124_s3 + $0x290] sm:$0xff]  ;;  %v503_v58 = vld [vmem:[%s2124_s3 + $0xa8] sm:$0xff]  ;;  %v1544_v62 = vpack.c.bf16 %v500_v54, %v498_v53 }
  0x69   : > { %1601 = vmatpush1.bf16.msra.mxu0 %v1600_v38  ;;  %1539 = vmatprep.subr.bf16.mxu1 %v1538_v39  ;;  %v505_v59 = vld [vmem:[%s2124_s3 + $0xb8] sm:$0xff]  ;;  %v567_v60 = vld [vmem:[%s2124_s3 + $0x2a8] sm:$0xff]  ;;  %v1608_v63 = vpack.c.bf16 %v564_v57, %v562_v55  ;;  %v502_v1 = vld [vmem:[%s2124_s3 + $0xa0] sm:$0xff] }
  0x6a   : > { %1603 = vmatprep.subr.bf16.mxu0 %v1602_v43  ;;  %v569_v61 = vld [vmem:[%s2124_s3 + $0x2b8] sm:$0xff]  ;;  %v1546_v0 = vpack.c.bf16 %v505_v59, %v503_v58  ;;  %v504_v2 = vld [vmem:[%s2124_s3 + $0xb0] sm:$0xff]  ;;  %v566_v3 = vld [vmem:[%s2124_s3 + $0x2a0] sm:$0xff] }
  0x6b   : > { %v1610_v4 = vpack.c.bf16 %v569_v61, %v567_v60  ;;  %v568_v5 = vld [vmem:[%s2124_s3 + $0x2b0] sm:$0xff]  ;;  %v507_v6 = vld [vmem:[%s2124_s3 + $0xc8] sm:$0xff]  ;;  %v509_v7 = vld [vmem:[%s2124_s3 + $0xd8] sm:$0xff]  ;;  %v1548_v10 = vpack.c.bf16 %v504_v2, %v502_v1 }
  0x6c   : > { %1541 = vmatpush1.bf16.msra.mxu1 %v1540_v50  ;;  %v571_v8 = vld [vmem:[%s2124_s3 + $0x2c8] sm:$0xff]  ;;  %v573_v9 = vld [vmem:[%s2124_s3 + $0x2d8] sm:$0xff]  ;;  %v1612_v11 = vpack.c.bf16 %v568_v5, %v566_v3  ;;  %v1550_v12 = vpack.c.bf16 %v509_v7, %v507_v6  ;;  %v506_v13 = vld [vmem:[%s2124_s3 + $0xc0] sm:$0xff] }
  0x6d   : > { %1605 = vmatpush1.bf16.msra.mxu0 %v1604_v51  ;;  %1543 = vmatprep.subr.bf16.mxu1 %v1542_v52  ;;  %v508_v14 = vld [vmem:[%s2124_s3 + $0xd0] sm:$0xff]  ;;  %v570_v15 = vld [vmem:[%s2124_s3 + $0x2c0] sm:$0xff]  ;;  %v1614_v16 = vpack.c.bf16 %v573_v9, %v571_v8  ;;  %v511_v18 = vld [vmem:[%s2124_s3 + $0xe8] sm:$0xff] }
  0x6e   : > { %1607 = vmatprep.subr.bf16.mxu0 %v1606_v56  ;;  %v572_v17 = vld [vmem:[%s2124_s3 + $0x2d0] sm:$0xff]  ;;  %v513_v19 = vld [vmem:[%s2124_s3 + $0xf8] sm:$0xff]  ;;  %v575_v20 = vld [vmem:[%s2124_s3 + $0x2e8] sm:$0xff]  ;;  %v1552_v22 = vpack.c.bf16 %v508_v14, %v506_v13 }
  0x6f   : > { %v577_v21 = vld [vmem:[%s2124_s3 + $0x2f8] sm:$0xff]  ;;  %v1616_v23 = vpack.c.bf16 %v572_v17, %v570_v15  ;;  %v1554_v24 = vpack.c.bf16 %v513_v19, %v511_v18  ;;  %v510_v25 = vld [vmem:[%s2124_s3 + $0xe0] sm:$0xff]  ;;  %v512_v26 = vld [vmem:[%s2124_s3 + $0xf0] sm:$0xff] }
  0x70   : > { %1545 = vmatpush1.bf16.msra.mxu1 %v1544_v62  ;;  %v574_v27 = vld [vmem:[%s2124_s3 + $0x2e0] sm:$0xff]  ;;  %v1618_v28 = vpack.c.bf16 %v577_v21, %v575_v20  ;;  %v576_v29 = vld [vmem:[%s2124_s3 + $0x2f0] sm:$0xff]  ;;  %v515_v30 = vld [vmem:[%s2124_s3 + $0x108] sm:$0xff]  ;;  %v1556_v34 = vpack.c.bf16 %v512_v26, %v510_v25 }
  0x71   : > { %1609 = vmatpush1.bf16.msra.mxu0 %v1608_v63  ;;  %1547 = vmatprep.subr.bf16.mxu1 %v1546_v0  ;;  %v517_v31 = vld [vmem:[%s2124_s3 + $0x118] sm:$0xff]  ;;  %v579_v32 = vld [vmem:[%s2124_s3 + $0x308] sm:$0xff]  ;;  %v1620_v35 = vpack.c.bf16 %v576_v29, %v574_v27  ;;  %v514_v37 = vld [vmem:[%s2124_s3 + $0x100] sm:$0xff] }
  0x72   : > { %1611 = vmatprep.subr.bf16.mxu0 %v1610_v4  ;;  %v581_v33 = vld [vmem:[%s2124_s3 + $0x318] sm:$0xff]  ;;  %v1558_v36 = vpack.c.bf16 %v517_v31, %v515_v30  ;;  %v516_v38 = vld [vmem:[%s2124_s3 + $0x110] sm:$0xff]  ;;  %v578_v39 = vld [vmem:[%s2124_s3 + $0x300] sm:$0xff] }
  0x73   : > { %v1622_v40 = vpack.c.bf16 %v581_v33, %v579_v32  ;;  %v580_v41 = vld [vmem:[%s2124_s3 + $0x310] sm:$0xff]  ;;  %v519_v42 = vld [vmem:[%s2124_s3 + $0x128] sm:$0xff]  ;;  %v521_v43 = vld [vmem:[%s2124_s3 + $0x138] sm:$0xff]  ;;  %v1560_v46 = vpack.c.bf16 %v516_v38, %v514_v37 }
  0x74   : > { %1549 = vmatpush1.bf16.msra.mxu1 %v1548_v10  ;;  %v583_v44 = vld [vmem:[%s2124_s3 + $0x328] sm:$0xff]  ;;  %v585_v45 = vld [vmem:[%s2124_s3 + $0x338] sm:$0xff]  ;;  %v1624_v47 = vpack.c.bf16 %v580_v41, %v578_v39  ;;  %v1562_v48 = vpack.c.bf16 %v521_v43, %v519_v42  ;;  %v518_v49 = vld [vmem:[%s2124_s3 + $0x120] sm:$0xff] }
  0x75   : > { %1613 = vmatpush1.bf16.msra.mxu0 %v1612_v11  ;;  %1551 = vmatprep.subr.bf16.mxu1 %v1550_v12  ;;  %v520_v50 = vld [vmem:[%s2124_s3 + $0x130] sm:$0xff]  ;;  %v582_v51 = vld [vmem:[%s2124_s3 + $0x320] sm:$0xff]  ;;  %v1626_v52 = vpack.c.bf16 %v585_v45, %v583_v44  ;;  %v523_v54 = vld [vmem:[%s2124_s3 + $0x148] sm:$0xff] }
  0x76   : > { %1615 = vmatprep.subr.bf16.mxu0 %v1614_v16  ;;  %v584_v53 = vld [vmem:[%s2124_s3 + $0x330] sm:$0xff]  ;;  %v525_v55 = vld [vmem:[%s2124_s3 + $0x158] sm:$0xff]  ;;  %v587_v56 = vld [vmem:[%s2124_s3 + $0x348] sm:$0xff]  ;;  %v1564_v58 = vpack.c.bf16 %v520_v50, %v518_v49 }
  0x77   : > { %v589_v57 = vld [vmem:[%s2124_s3 + $0x358] sm:$0xff]  ;;  %v1628_v59 = vpack.c.bf16 %v584_v53, %v582_v51  ;;  %v1566_v60 = vpack.c.bf16 %v525_v55, %v523_v54  ;;  %v522_v61 = vld [vmem:[%s2124_s3 + $0x140] sm:$0xff]  ;;  %v524_v62 = vld [vmem:[%s2124_s3 + $0x150] sm:$0xff] }
  0x78   : > { %1553 = vmatpush1.bf16.msra.mxu1 %v1552_v22  ;;  %v586_v63 = vld [vmem:[%s2124_s3 + $0x340] sm:$0xff]  ;;  %v1630_v0 = vpack.c.bf16 %v589_v57, %v587_v56  ;;  %v588_v1 = vld [vmem:[%s2124_s3 + $0x350] sm:$0xff]  ;;  %v527_v2 = vld [vmem:[%s2124_s3 + $0x168] sm:$0xff]  ;;  %v1568_v6 = vpack.c.bf16 %v524_v62, %v522_v61 }
  0x79   : > { %1617 = vmatpush1.bf16.msra.mxu0 %v1616_v23  ;;  %1555 = vmatprep.subr.bf16.mxu1 %v1554_v24  ;;  %v529_v3 = vld [vmem:[%s2124_s3 + $0x178] sm:$0xff]  ;;  %v591_v4 = vld [vmem:[%s2124_s3 + $0x368] sm:$0xff]  ;;  %v526_v7 = vld [vmem:[%s2124_s3 + $0x160] sm:$0xff]  ;;  %v1632_v8 = vpack.c.bf16 %v588_v1, %v586_v63 }
  0x7a   : > { %1619 = vmatprep.subr.bf16.mxu0 %v1618_v28  ;;  %v593_v5 = vld [vmem:[%s2124_s3 + $0x378] sm:$0xff]  ;;  %v1570_v9 = vpack.c.bf16 %v529_v3, %v527_v2  ;;  %v528_v10 = vld [vmem:[%s2124_s3 + $0x170] sm:$0xff]  ;;  %v590_v11 = vld [vmem:[%s2124_s3 + $0x360] sm:$0xff] }
  0x7b   : > { %v592_v12 = vld [vmem:[%s2124_s3 + $0x370] sm:$0xff]  ;;  %v1634_v13 = vpack.c.bf16 %v593_v5, %v591_v4  ;;  %v531_v14 = vld [vmem:[%s2124_s3 + $0x188] sm:$0xff]  ;;  %v533_v15 = vld [vmem:[%s2124_s3 + $0x198] sm:$0xff]  ;;  %v1572_v20 = vpack.c.bf16 %v528_v10, %v526_v7 }
  0x7c   : > { %1557 = vmatpush1.bf16.msra.mxu1 %v1556_v34  ;;  %v355_v16 = vld [vmem:[#allocation3 + $0x8] sm:$0xff]  ;;  %v597_v18 = vld [vmem:[%s2124_s3 + $0x398] sm:$0xff]  ;;  %v1636_v21 = vpack.c.bf16 %v592_v12, %v590_v11  ;;  %v1574_v22 = vpack.c.bf16 %v533_v15, %v531_v14  ;;  %v530_v23 = vld [vmem:[%s2124_s3 + $0x180] sm:$0xff] }
  0x7d   : > { %1621 = vmatpush1.bf16.msra.mxu0 %v1620_v35  ;;  %1559 = vmatprep.subr.bf16.mxu1 %v1558_v36  ;;  %v595_v17 = vld [vmem:[%s2124_s3 + $0x388] sm:$0xff]  ;;  %v357_v19 = vld [vmem:[#allocation3 + $0x18] sm:$0xff]  ;;  %v532_v24 = vld [vmem:[%s2124_s3 + $0x190] sm:$0xff] }
  0x7e   : > { %1623 = vmatprep.subr.bf16.mxu0 %v1622_v40  ;;  %674 = vmatprep.mubr.f32.mxu1 %v355_v16  ;;  %v594_v25 = vld [vmem:[%s2124_s3 + $0x380] sm:$0xff]  ;;  %v1638_v26 = vpack.c.bf16 %v597_v18, %v595_v17  ;;  %v596_v27 = vld [vmem:[%s2124_s3 + $0x390] sm:$0xff]  ;;  %v535_v28 = vld [vmem:[%s2124_s3 + $0x1a8] sm:$0xff]  ;;  %v1576_v32 = vpack.c.bf16 %v532_v24, %v530_v23 }
  0x7f   : > { %931 = vmatprep.mubr.f32.mxu0 %v357_v19  ;;  %v537_v29 = vld [vmem:[%s2124_s3 + $0x1b8] sm:$0xff]  ;;  %v599_v30 = vld [vmem:[%s2124_s3 + $0x3a8] sm:$0xff]  ;;  %v1640_v33 = vpack.c.bf16 %v596_v27, %v594_v25  ;;  %v534_v35 = vld [vmem:[%s2124_s3 + $0x1a0] sm:$0xff] }
  0x80   : > { %1561 = vmatpush1.bf16.msra.mxu1 %v1560_v46  ;;  %v601_v31 = vld [vmem:[%s2124_s3 + $0x3b8] sm:$0xff]  ;;  %v1578_v34 = vpack.c.bf16 %v537_v29, %v535_v28  ;;  %v536_v36 = vld [vmem:[%s2124_s3 + $0x1b0] sm:$0xff]  ;;  %v598_v37 = vld [vmem:[%s2124_s3 + $0x3a0] sm:$0xff] }
  0x81   : > { %1625 = vmatpush1.bf16.msra.mxu0 %v1624_v47  ;;  %1563 = vmatprep.subr.bf16.mxu1 %v1562_v48  ;;  %v1642_v38 = vpack.c.bf16 %v601_v31, %v599_v30  ;;  %v600_v39 = vld [vmem:[%s2124_s3 + $0x3b0] sm:$0xff]  ;;  %v539_v40 = vld [vmem:[%s2124_s3 + $0x1c8] sm:$0xff]  ;;  %v541_v41 = vld [vmem:[%s2124_s3 + $0x1d8] sm:$0xff]  ;;  %v1580_v44 = vpack.c.bf16 %v536_v36, %v534_v35 }
  0x82   : > { %1627 = vmatprep.subr.bf16.mxu0 %v1626_v52  ;;  %v603_v42 = vld [vmem:[%s2124_s3 + $0x3c8] sm:$0xff]  ;;  %v605_v43 = vld [vmem:[%s2124_s3 + $0x3d8] sm:$0xff]  ;;  %v1644_v45 = vpack.c.bf16 %v600_v39, %v598_v37  ;;  %v1582_v46 = vpack.c.bf16 %v541_v41, %v539_v40  ;;  %v538_v47 = vld [vmem:[%s2124_s3 + $0x1c0] sm:$0xff] }
  0x83   : > { %v540_v48 = vld [vmem:[%s2124_s3 + $0x1d0] sm:$0xff]  ;;  %v602_v49 = vld [vmem:[%s2124_s3 + $0x3c0] sm:$0xff]  ;;  %v1646_v50 = vpack.c.bf16 %v605_v43, %v603_v42  ;;  %v543_v52 = vld [vmem:[%s2124_s3 + $0x1e8] sm:$0xff] }
  0x84   : > { %1565 = vmatpush1.bf16.msra.mxu1 %v1564_v58  ;;  %v604_v51 = vld [vmem:[%s2124_s3 + $0x3d0] sm:$0xff]  ;;  %v545_v53 = vld [vmem:[%s2124_s3 + $0x1f8] sm:$0xff]  ;;  %v607_v54 = vld [vmem:[%s2124_s3 + $0x3e8] sm:$0xff]  ;;  %v1584_v56 = vpack.c.bf16 %v540_v48, %v538_v47 }
  0x85   : > { %1629 = vmatpush1.bf16.msra.mxu0 %v1628_v59  ;;  %1567 = vmatprep.subr.bf16.mxu1 %v1566_v60  ;;  %v609_v55 = vld [vmem:[%s2124_s3 + $0x3f8] sm:$0xff]  ;;  %v1648_v57 = vpack.c.bf16 %v604_v51, %v602_v49  ;;  %v1586_v58 = vpack.c.bf16 %v545_v53, %v543_v52  ;;  %v542_v59 = vld [vmem:[%s2124_s3 + $0x1e0] sm:$0xff]  ;;  %v544_v60 = vld [vmem:[%s2124_s3 + $0x1f0] sm:$0xff] }
  0x86   : > { %1631 = vmatprep.subr.bf16.mxu0 %v1630_v0  ;;  %v1650_v61 = vpack.c.bf16 %v609_v55, %v607_v54  ;;  %v606_v62 = vld [vmem:[%s2124_s3 + $0x3e0] sm:$0xff]  ;;  %v608_v63 = vld [vmem:[%s2124_s3 + $0x3f0] sm:$0xff]  ;;  %v1588_v0 = vpack.c.bf16 %v544_v60, %v542_v59  ;;  %v359_v4 = vld [vmem:[#allocation3 + $0x28] sm:$0xff] }
  0x87   : > { %v1652_v1 = vpack.c.bf16 %v608_v63, %v606_v62  ;;  %v354_v2 = vld [vmem:[#allocation3] sm:$0xff]  ;;  %v356_v3 = vld [vmem:[#allocation3 + $0x10] sm:$0xff]  ;;  %v361_v5 = vld [vmem:[#allocation3 + $0x38] sm:$0xff] }
  0x88   : > { %1569 = vmatpush1.bf16.msra.mxu1 %v1568_v6  ;;  %v358_v6 = vld [vmem:[#allocation3 + $0x20] sm:$0xff]  ;;  %v360_v7 = vld [vmem:[#allocation3 + $0x30] sm:$0xff]  ;;  %v367_v12 = vld [vmem:[#allocation3 + $0x68] sm:$0xff] }
  0x89   : > { %1633 = vmatpush1.bf16.msra.mxu0 %v1632_v8  ;;  %1571 = vmatprep.subr.bf16.mxu1 %v1570_v9  ;;  %v363_v8 = vld [vmem:[#allocation3 + $0x48] sm:$0xff]  ;;  %v365_v9 = vld [vmem:[#allocation3 + $0x58] sm:$0xff]  ;;  %v362_v10 = vld [vmem:[#allocation3 + $0x40] sm:$0xff] }
  0x8a   : > { %1635 = vmatprep.subr.bf16.mxu0 %v1634_v13  ;;  %v364_v11 = vld [vmem:[#allocation3 + $0x50] sm:$0xff]  ;;  %v369_v13 = vld [vmem:[#allocation3 + $0x78] sm:$0xff]  ;;  %v366_v14 = vld [vmem:[#allocation3 + $0x60] sm:$0xff] }
  0x8b   : > { %v368_v15 = vld [vmem:[#allocation3 + $0x70] sm:$0xff]  ;;  %v371_v16 = vld [vmem:[#allocation3 + $0x88] sm:$0xff]  ;;  %v373_v17 = vld [vmem:[#allocation3 + $0x98] sm:$0xff] }
  0x8c   : > { %1573 = vmatpush1.bf16.msra.mxu1 %v1572_v20  ;;  %v370_v18 = vld [vmem:[#allocation3 + $0x80] sm:$0xff]  ;;  %v372_v19 = vld [vmem:[#allocation3 + $0x90] sm:$0xff]  ;;  %v375_v20 = vld [vmem:[#allocation3 + $0xa8] sm:$0xff] }
  0x8d   : > { %1637 = vmatpush1.bf16.msra.mxu0 %v1636_v21  ;;  %1575 = vmatprep.subr.bf16.mxu1 %v1574_v22  ;;  %v377_v21 = vld [vmem:[#allocation3 + $0xb8] sm:$0xff]  ;;  %v374_v22 = vld [vmem:[#allocation3 + $0xa0] sm:$0xff]  ;;  %v376_v23 = vld [vmem:[#allocation3 + $0xb0] sm:$0xff] }
  0x8e   : > { %1639 = vmatprep.subr.bf16.mxu0 %v1638_v26  ;;  %v379_v24 = vld [vmem:[#allocation3 + $0xc8] sm:$0xff]  ;;  %v381_v25 = vld [vmem:[#allocation3 + $0xd8] sm:$0xff]  ;;  %v378_v26 = vld [vmem:[#allocation3 + $0xc0] sm:$0xff] }
  0x8f   : > { %v380_v27 = vld [vmem:[#allocation3 + $0xd0] sm:$0xff]  ;;  %v383_v28 = vld [vmem:[#allocation3 + $0xe8] sm:$0xff]  ;;  %v385_v29 = vld [vmem:[#allocation3 + $0xf8] sm:$0xff] }
  0x90   : > { %1577 = vmatpush1.bf16.msra.mxu1 %v1576_v32  ;;  %v382_v30 = vld [vmem:[#allocation3 + $0xe0] sm:$0xff]  ;;  %v384_v31 = vld [vmem:[#allocation3 + $0xf0] sm:$0xff]  ;;  %v387_v32 = vld [vmem:[#allocation3 + $0x108] sm:$0xff] }
  0x91   : > { %1641 = vmatpush1.bf16.msra.mxu0 %v1640_v33  ;;  %1579 = vmatprep.subr.bf16.mxu1 %v1578_v34  ;;  %v389_v33 = vld [vmem:[#allocation3 + $0x118] sm:$0xff]  ;;  %v386_v34 = vld [vmem:[#allocation3 + $0x100] sm:$0xff]  ;;  %v388_v35 = vld [vmem:[#allocation3 + $0x110] sm:$0xff] }
  0x92   : > { %1643 = vmatprep.subr.bf16.mxu0 %v1642_v38  ;;  %v391_v36 = vld [vmem:[#allocation3 + $0x128] sm:$0xff]  ;;  %v393_v37 = vld [vmem:[#allocation3 + $0x138] sm:$0xff]  ;;  %v390_v38 = vld [vmem:[#allocation3 + $0x120] sm:$0xff] }
  0x93   : > { %v392_v39 = vld [vmem:[#allocation3 + $0x130] sm:$0xff]  ;;  %v395_v40 = vld [vmem:[#allocation3 + $0x148] sm:$0xff]  ;;  %v397_v41 = vld [vmem:[#allocation3 + $0x158] sm:$0xff] }
  0x94   : > { %1581 = vmatpush1.bf16.msra.mxu1 %v1580_v44  ;;  %v394_v42 = vld [vmem:[#allocation3 + $0x140] sm:$0xff]  ;;  %v396_v43 = vld [vmem:[#allocation3 + $0x150] sm:$0xff]  ;;  %v399_v44 = vld [vmem:[#allocation3 + $0x168] sm:$0xff] }
  0x95   : > { %1645 = vmatpush1.bf16.msra.mxu0 %v1644_v45  ;;  %1583 = vmatprep.subr.bf16.mxu1 %v1582_v46  ;;  %v401_v45 = vld [vmem:[#allocation3 + $0x178] sm:$0xff]  ;;  %v398_v46 = vld [vmem:[#allocation3 + $0x160] sm:$0xff]  ;;  %v400_v47 = vld [vmem:[#allocation3 + $0x170] sm:$0xff] }
  0x96   : > { %1647 = vmatprep.subr.bf16.mxu0 %v1646_v50  ;;  %v403_v48 = vld [vmem:[#allocation3 + $0x188] sm:$0xff]  ;;  %v405_v49 = vld [vmem:[#allocation3 + $0x198] sm:$0xff]  ;;  %v402_v50 = vld [vmem:[#allocation3 + $0x180] sm:$0xff] }
  0x97   : > { %v404_v51 = vld [vmem:[#allocation3 + $0x190] sm:$0xff]  ;;  %v407_v52 = vld [vmem:[#allocation3 + $0x1a8] sm:$0xff]  ;;  %v409_v53 = vld [vmem:[#allocation3 + $0x1b8] sm:$0xff] }
  0x98   : > { %1585 = vmatpush1.bf16.msra.mxu1 %v1584_v56  ;;  %v406_v54 = vld [vmem:[#allocation3 + $0x1a0] sm:$0xff]  ;;  %v408_v55 = vld [vmem:[#allocation3 + $0x1b0] sm:$0xff]  ;;  %v411_v56 = vld [vmem:[#allocation3 + $0x1c8] sm:$0xff] }
  0x99   : > { %1649 = vmatpush1.bf16.msra.mxu0 %v1648_v57  ;;  %1587 = vmatprep.subr.bf16.mxu1 %v1586_v58  ;;  %v413_v57 = vld [vmem:[#allocation3 + $0x1d8] sm:$0xff]  ;;  %v410_v58 = vld [vmem:[#allocation3 + $0x1c0] sm:$0xff]  ;;  %v412_v59 = vld [vmem:[#allocation3 + $0x1d0] sm:$0xff] }
  0x9a   : > { %1651 = vmatprep.subr.bf16.mxu0 %v1650_v61  ;;  %v415_v60 = vld [vmem:[#allocation3 + $0x1e8] sm:$0xff]  ;;  %v417_v61 = vld [vmem:[#allocation3 + $0x1f8] sm:$0xff]  ;;  %v414_v62 = vld [vmem:[#allocation3 + $0x1e0] sm:$0xff] }
  0x9b   : > { %v416_v63 = vld [vmem:[#allocation3 + $0x1f0] sm:$0xff] }
  0x9c   : > { %1589 = vmatpush1.bf16.msra.mxu1 %v1588_v0  ;;  %v419_v0 = vld [vmem:[#allocation3 + $0x208] sm:$0xff] }
  0x9d   : > { %1653 = vmatpush1.bf16.msra.mxu0 %v1652_v1  ;;  %v421_v1 = vld [vmem:[#allocation3 + $0x218] sm:$0xff] }
  0x9f   : > { %675 = vmatmul.mubr.f32.vlgmr.msra.gmra.mrb[0].mxu1 %v354_v2  ;;  %v418_v2 = vld [vmem:[#allocation3 + $0x200] sm:$0xff] }
  0xa0   : > { %932 = vmatmul.mubr.f32.vlgmr.msra.gmra.mrb[0].mxu0 %v356_v3  ;;  %680 = vmatprep.mubr.f32.mxu1 %v359_v4  ;;  %v420_v3 = vld [vmem:[#allocation3 + $0x210] sm:$0xff]  ;;  %v423_v4 = vld [vmem:[#allocation3 + $0x228] sm:$0xff] }
  0xa1   : > { %937 = vmatprep.mubr.f32.mxu0 %v361_v5  ;;  %v425_v5 = vld [vmem:[#allocation3 + $0x238] sm:$0xff] }
  0xa3   : > { %681 = vmatmul.mubr.f32.gmra.mrb[2].mxu1 %v358_v6  ;;  %v422_v6 = vld [vmem:[#allocation3 + $0x220] sm:$0xff] }
  0xa4   : > { %938 = vmatmul.mubr.f32.gmra.mrb[2].mxu0 %v360_v7  ;;  %686 = vmatprep.mubr.f32.mxu1 %v363_v8  ;;  %v424_v7 = vld [vmem:[#allocation3 + $0x230] sm:$0xff]  ;;  %v427_v8 = vld [vmem:[#allocation3 + $0x248] sm:$0xff] }
  0xa5   : > { %943 = vmatprep.mubr.f32.mxu0 %v365_v9  ;;  %v429_v9 = vld [vmem:[#allocation3 + $0x258] sm:$0xff] }
  0xa7   : > { %687 = vmatmul.mubr.f32.gmra.mrb[4].mxu1 %v362_v10  ;;  %v426_v10 = vld [vmem:[#allocation3 + $0x240] sm:$0xff] }
  0xa8   : > { %944 = vmatmul.mubr.f32.gmra.mrb[4].mxu0 %v364_v11  ;;  %692 = vmatprep.mubr.f32.mxu1 %v367_v12  ;;  %v428_v11 = vld [vmem:[#allocation3 + $0x250] sm:$0xff]  ;;  %v431_v12 = vld [vmem:[#allocation3 + $0x268] sm:$0xff] }
  0xa9   : > { %949 = vmatprep.mubr.f32.mxu0 %v369_v13  ;;  %v433_v13 = vld [vmem:[#allocation3 + $0x278] sm:$0xff] }
  0xab   : > { %693 = vmatmul.mubr.f32.gmra.mrb[6].mxu1 %v366_v14  ;;  %v430_v14 = vld [vmem:[#allocation3 + $0x260] sm:$0xff] }
  0xac   : > { %950 = vmatmul.mubr.f32.gmra.mrb[6].mxu0 %v368_v15  ;;  %698 = vmatprep.mubr.f32.mxu1 %v371_v16  ;;  %v432_v15 = vld [vmem:[#allocation3 + $0x270] sm:$0xff]  ;;  %v435_v16 = vld [vmem:[#allocation3 + $0x288] sm:$0xff] }
  0xad   : > { %955 = vmatprep.mubr.f32.mxu0 %v373_v17  ;;  %v437_v17 = vld [vmem:[#allocation3 + $0x298] sm:$0xff] }
  0xaf   : > { %699 = vmatmul.mubr.f32.gmra.mrb[8].mxu1 %v370_v18  ;;  %v434_v18 = vld [vmem:[#allocation3 + $0x280] sm:$0xff] }
  0xb0   : > { %956 = vmatmul.mubr.f32.gmra.mrb[8].mxu0 %v372_v19  ;;  %704 = vmatprep.mubr.f32.mxu1 %v375_v20  ;;  %v436_v19 = vld [vmem:[#allocation3 + $0x290] sm:$0xff]  ;;  %v439_v20 = vld [vmem:[#allocation3 + $0x2a8] sm:$0xff] }
  0xb1   : > { %961 = vmatprep.mubr.f32.mxu0 %v377_v21  ;;  %v441_v21 = vld [vmem:[#allocation3 + $0x2b8] sm:$0xff] }
  0xb3   : > { %705 = vmatmul.mubr.f32.gmra.mrb[10].mxu1 %v374_v22  ;;  %v438_v22 = vld [vmem:[#allocation3 + $0x2a0] sm:$0xff] }
  0xb4   : > { %962 = vmatmul.mubr.f32.gmra.mrb[10].mxu0 %v376_v23  ;;  %710 = vmatprep.mubr.f32.mxu1 %v379_v24  ;;  %v440_v23 = vld [vmem:[#allocation3 + $0x2b0] sm:$0xff]  ;;  %v443_v24 = vld [vmem:[#allocation3 + $0x2c8] sm:$0xff] }
  0xb5   : > { %967 = vmatprep.mubr.f32.mxu0 %v381_v25  ;;  %v445_v25 = vld [vmem:[#allocation3 + $0x2d8] sm:$0xff] }
  0xb7   : > { %711 = vmatmul.mubr.f32.gmra.mrb[12].mxu1 %v378_v26  ;;  %v442_v26 = vld [vmem:[#allocation3 + $0x2c0] sm:$0xff] }
  0xb8   : > { %968 = vmatmul.mubr.f32.gmra.mrb[12].mxu0 %v380_v27  ;;  %716 = vmatprep.mubr.f32.mxu1 %v383_v28  ;;  %v444_v27 = vld [vmem:[#allocation3 + $0x2d0] sm:$0xff]  ;;  %v447_v28 = vld [vmem:[#allocation3 + $0x2e8] sm:$0xff] }
  0xb9   : > { %973 = vmatprep.mubr.f32.mxu0 %v385_v29  ;;  %v449_v29 = vld [vmem:[#allocation3 + $0x2f8] sm:$0xff] }
  0xbb   : > { %717 = vmatmul.mubr.f32.gmra.mrb[14].mxu1 %v382_v30  ;;  %v446_v30 = vld [vmem:[#allocation3 + $0x2e0] sm:$0xff] }
  0xbc   : > { %974 = vmatmul.mubr.f32.gmra.mrb[14].mxu0 %v384_v31  ;;  %722 = vmatprep.mubr.f32.mxu1 %v387_v32  ;;  %v448_v31 = vld [vmem:[#allocation3 + $0x2f0] sm:$0xff]  ;;  %v451_v32 = vld [vmem:[#allocation3 + $0x308] sm:$0xff] }
  0xbd   : > { %979 = vmatprep.mubr.f32.mxu0 %v389_v33  ;;  %v453_v33 = vld [vmem:[#allocation3 + $0x318] sm:$0xff] }
  0xbf   : > { %723 = vmatmul.mubr.f32.gmra.mrb[16].mxu1 %v386_v34  ;;  %v450_v34 = vld [vmem:[#allocation3 + $0x300] sm:$0xff] }
  0xc0   : > { %980 = vmatmul.mubr.f32.gmra.mrb[16].mxu0 %v388_v35  ;;  %728 = vmatprep.mubr.f32.mxu1 %v391_v36  ;;  %v452_v35 = vld [vmem:[#allocation3 + $0x310] sm:$0xff]  ;;  %v455_v36 = vld [vmem:[#allocation3 + $0x328] sm:$0xff] }
  0xc1   : > { %985 = vmatprep.mubr.f32.mxu0 %v393_v37  ;;  %v457_v37 = vld [vmem:[#allocation3 + $0x338] sm:$0xff] }
  0xc3   : > { %729 = vmatmul.mubr.f32.gmra.mrb[18].mxu1 %v390_v38  ;;  %v454_v38 = vld [vmem:[#allocation3 + $0x320] sm:$0xff] }
  0xc4   : > { %986 = vmatmul.mubr.f32.gmra.mrb[18].mxu0 %v392_v39  ;;  %734 = vmatprep.mubr.f32.mxu1 %v395_v40  ;;  %v456_v39 = vld [vmem:[#allocation3 + $0x330] sm:$0xff]  ;;  %v459_v40 = vld [vmem:[#allocation3 + $0x348] sm:$0xff] }
  0xc5   : > { %991 = vmatprep.mubr.f32.mxu0 %v397_v41  ;;  %v461_v41 = vld [vmem:[#allocation3 + $0x358] sm:$0xff] }
  0xc7   : > { %735 = vmatmul.mubr.f32.gmra.mrb[20].mxu1 %v394_v42  ;;  %v458_v42 = vld [vmem:[#allocation3 + $0x340] sm:$0xff] }
  0xc8   : > { %992 = vmatmul.mubr.f32.gmra.mrb[20].mxu0 %v396_v43  ;;  %740 = vmatprep.mubr.f32.mxu1 %v399_v44  ;;  %v460_v43 = vld [vmem:[#allocation3 + $0x350] sm:$0xff]  ;;  %v463_v44 = vld [vmem:[#allocation3 + $0x368] sm:$0xff] }
  0xc9   : > { %997 = vmatprep.mubr.f32.mxu0 %v401_v45  ;;  %v465_v45 = vld [vmem:[#allocation3 + $0x378] sm:$0xff] }
  0xcb   : > { %741 = vmatmul.mubr.f32.gmra.mrb[22].mxu1 %v398_v46  ;;  %v462_v46 = vld [vmem:[#allocation3 + $0x360] sm:$0xff] }
  0xcc   : > { %998 = vmatmul.mubr.f32.gmra.mrb[22].mxu0 %v400_v47  ;;  %746 = vmatprep.mubr.f32.mxu1 %v403_v48  ;;  %v464_v47 = vld [vmem:[#allocation3 + $0x370] sm:$0xff]  ;;  %v467_v48 = vld [vmem:[#allocation3 + $0x388] sm:$0xff] }
  0xcd   : > { %1003 = vmatprep.mubr.f32.mxu0 %v405_v49  ;;  %v469_v49 = vld [vmem:[#allocation3 + $0x398] sm:$0xff] }
  0xcf   : > { %747 = vmatmul.mubr.f32.gmra.mrb[24].mxu1 %v402_v50  ;;  %v466_v50 = vld [vmem:[#allocation3 + $0x380] sm:$0xff] }
  0xd0   : > { %1004 = vmatmul.mubr.f32.gmra.mrb[24].mxu0 %v404_v51  ;;  %752 = vmatprep.mubr.f32.mxu1 %v407_v52  ;;  %v468_v51 = vld [vmem:[#allocation3 + $0x390] sm:$0xff]  ;;  %v471_v52 = vld [vmem:[#allocation3 + $0x3a8] sm:$0xff] }
  0xd1   : > { %1009 = vmatprep.mubr.f32.mxu0 %v409_v53  ;;  %v473_v53 = vld [vmem:[#allocation3 + $0x3b8] sm:$0xff] }
  0xd3   : > { %753 = vmatmul.mubr.f32.gmra.mrb[26].mxu1 %v406_v54  ;;  %v470_v54 = vld [vmem:[#allocation3 + $0x3a0] sm:$0xff] }
  0xd4   : > { %1010 = vmatmul.mubr.f32.gmra.mrb[26].mxu0 %v408_v55  ;;  %758 = vmatprep.mubr.f32.mxu1 %v411_v56  ;;  %v472_v55 = vld [vmem:[#allocation3 + $0x3b0] sm:$0xff]  ;;  %v475_v56 = vld [vmem:[#allocation3 + $0x3c8] sm:$0xff] }
  0xd5   : > { %1015 = vmatprep.mubr.f32.mxu0 %v413_v57  ;;  %v477_v57 = vld [vmem:[#allocation3 + $0x3d8] sm:$0xff] }
  0xd7   : > { %759 = vmatmul.mubr.f32.gmra.mrb[28].mxu1 %v410_v58  ;;  %v474_v58 = vld [vmem:[#allocation3 + $0x3c0] sm:$0xff] }
  0xd8   : > { %1016 = vmatmul.mubr.f32.gmra.mrb[28].mxu0 %v412_v59  ;;  %764 = vmatprep.mubr.f32.mxu1 %v415_v60  ;;  %v476_v59 = vld [vmem:[#allocation3 + $0x3d0] sm:$0xff]  ;;  %v479_v60 = vld [vmem:[#allocation3 + $0x3e8] sm:$0xff] }
  0xd9   : > { %1021 = vmatprep.mubr.f32.mxu0 %v417_v61  ;;  %v481_v61 = vld [vmem:[#allocation3 + $0x3f8] sm:$0xff] }
  0xdb   : > { %765 = vmatmul.mubr.f32.gmra.mrb[30].mxu1 %v414_v62  ;;  %v478_v62 = vld [vmem:[#allocation3 + $0x3e0] sm:$0xff] }
  0xdc   : > { %1022 = vmatmul.mubr.f32.gmra.mrb[30].mxu0 %v416_v63  ;;  %770 = vmatprep.mubr.f32.mxu1 %v419_v0  ;;  %v480_v63 = vld [vmem:[#allocation3 + $0x3f0] sm:$0xff] }
  0xdd   : > { %1027 = vmatprep.mubr.f32.mxu0 %v421_v1 }
  0xdf   : > { %771 = vmatmul.mubr.f32.gmra.mrb[32].mxu1 %v418_v2 }
  0xe0   : > { %1028 = vmatmul.mubr.f32.gmra.mrb[32].mxu0 %v420_v3  ;;  %776 = vmatprep.mubr.f32.mxu1 %v423_v4 }
  0xe1   : > { %1033 = vmatprep.mubr.f32.mxu0 %v425_v5 }
  0xe3   : > { %777 = vmatmul.mubr.f32.gmra.mrb[34].mxu1 %v422_v6 }
  0xe4   : > { %1034 = vmatmul.mubr.f32.gmra.mrb[34].mxu0 %v424_v7  ;;  %782 = vmatprep.mubr.f32.mxu1 %v427_v8 }
  0xe5   : > { %1039 = vmatprep.mubr.f32.mxu0 %v429_v9 }
  0xe7   : > { %783 = vmatmul.mubr.f32.gmra.mrb[36].mxu1 %v426_v10 }
  0xe8   : > { %1040 = vmatmul.mubr.f32.gmra.mrb[36].mxu0 %v428_v11  ;;  %788 = vmatprep.mubr.f32.mxu1 %v431_v12 }
  0xe9   : > { %1045 = vmatprep.mubr.f32.mxu0 %v433_v13 }
  0xeb   : > { %789 = vmatmul.mubr.f32.gmra.mrb[38].mxu1 %v430_v14 }
  0xec   : > { %1046 = vmatmul.mubr.f32.gmra.mrb[38].mxu0 %v432_v15  ;;  %794 = vmatprep.mubr.f32.mxu1 %v435_v16 }
  0xed   : > { %1051 = vmatprep.mubr.f32.mxu0 %v437_v17 }
  0xef   : > { %795 = vmatmul.mubr.f32.gmra.mrb[40].mxu1 %v434_v18 }
  0xf0   : > { %1052 = vmatmul.mubr.f32.gmra.mrb[40].mxu0 %v436_v19  ;;  %800 = vmatprep.mubr.f32.mxu1 %v439_v20 }
  0xf1   : > { %1057 = vmatprep.mubr.f32.mxu0 %v441_v21 }
  0xf3   : > { %801 = vmatmul.mubr.f32.gmra.mrb[42].mxu1 %v438_v22 }
  0xf4   : > { %1058 = vmatmul.mubr.f32.gmra.mrb[42].mxu0 %v440_v23  ;;  %806 = vmatprep.mubr.f32.mxu1 %v443_v24 }
  0xf5   : > { %1063 = vmatprep.mubr.f32.mxu0 %v445_v25 }
  0xf7   : > { %807 = vmatmul.mubr.f32.gmra.mrb[44].mxu1 %v442_v26 }
  0xf8   : > { %1064 = vmatmul.mubr.f32.gmra.mrb[44].mxu0 %v444_v27  ;;  %812 = vmatprep.mubr.f32.mxu1 %v447_v28 }
  0xf9   : > { %1069 = vmatprep.mubr.f32.mxu0 %v449_v29 }
  0xfb   : > { %813 = vmatmul.mubr.f32.gmra.mrb[46].mxu1 %v446_v30 }
  0xfc   : > { %1070 = vmatmul.mubr.f32.gmra.mrb[46].mxu0 %v448_v31  ;;  %818 = vmatprep.mubr.f32.mxu1 %v451_v32 }
  0xfd   : > { %1075 = vmatprep.mubr.f32.mxu0 %v453_v33 }
  0xff   : > { %819 = vmatmul.mubr.f32.gmra.mrb[48].mxu1 %v450_v34 }
 0x100   : > { %1076 = vmatmul.mubr.f32.gmra.mrb[48].mxu0 %v452_v35  ;;  %824 = vmatprep.mubr.f32.mxu1 %v455_v36 }
 0x101   : > { %1081 = vmatprep.mubr.f32.mxu0 %v457_v37 }
 0x103   : > { %825 = vmatmul.mubr.f32.gmra.mrb[50].mxu1 %v454_v38 }
 0x104   : > { %1082 = vmatmul.mubr.f32.gmra.mrb[50].mxu0 %v456_v39  ;;  %830 = vmatprep.mubr.f32.mxu1 %v459_v40 }
 0x105   : > { %1087 = vmatprep.mubr.f32.mxu0 %v461_v41 }
 0x107   : > { %831 = vmatmul.mubr.f32.gmra.mrb[52].mxu1 %v458_v42 }
 0x108   : > { %1088 = vmatmul.mubr.f32.gmra.mrb[52].mxu0 %v460_v43  ;;  %836 = vmatprep.mubr.f32.mxu1 %v463_v44 }
 0x109   : > { %1093 = vmatprep.mubr.f32.mxu0 %v465_v45 }
 0x10b   : > { %837 = vmatmul.mubr.f32.gmra.mrb[54].mxu1 %v462_v46 }
 0x10c   : > { %1094 = vmatmul.mubr.f32.gmra.mrb[54].mxu0 %v464_v47  ;;  %842 = vmatprep.mubr.f32.mxu1 %v467_v48 }
 0x10d   : > { %1099 = vmatprep.mubr.f32.mxu0 %v469_v49 }
 0x10f   : > { %843 = vmatmul.mubr.f32.gmra.mrb[56].mxu1 %v466_v50 }
 0x110   : > { %1100 = vmatmul.mubr.f32.gmra.mrb[56].mxu0 %v468_v51  ;;  %848 = vmatprep.mubr.f32.mxu1 %v471_v52 }
 0x111   : > { %1105 = vmatprep.mubr.f32.mxu0 %v473_v53 }
 0x113   : > { %849 = vmatmul.mubr.f32.gmra.mrb[58].mxu1 %v470_v54 }
 0x114   : > { %1106 = vmatmul.mubr.f32.gmra.mrb[58].mxu0 %v472_v55  ;;  %854 = vmatprep.mubr.f32.mxu1 %v475_v56 }
 0x115   : > { %1111 = vmatprep.mubr.f32.mxu0 %v477_v57 }
 0x117   : > { %855 = vmatmul.mubr.f32.gmra.mrb[60].mxu1 %v474_v58 }
 0x118   : > { %1112 = vmatmul.mubr.f32.gmra.mrb[60].mxu0 %v476_v59  ;;  %860 = vmatprep.mubr.f32.mxu1 %v479_v60 }
 0x119   : > { %1117 = vmatprep.mubr.f32.mxu0 %v481_v61 }
 0x11b   : > { %861 = vmatmul.mubr.f32.gmra.mrb[62].mxu1 %v478_v62 }
 0x11c   : > { %1118 = vmatmul.mubr.f32.gmra.mrb[62].mxu0 %v480_v63 }
 0x172   : > { %v676_v0 = vpop.f32.mrb[0].mxu1 }
 0x173   : > { %v933_v1 = vpop.f32.mrb[0].mxu0  ;;  %v678_v2 = vpop.f32.mrb[1].mxu1 }
 0x174   : > { %v934_v3 = vadd.f32 %v933_v1, %v676_v0  ;;  %v935_v4 = vpop.f32.mrb[1].mxu0 }
 0x175   : > { %v936_v5 = vadd.f32 %v935_v4, %v678_v2 }
 0x176   : > { %1319 = vst [vmem:[%s2259_s19] sm:$0xff] %v934_v3  ;;  %v682_v6 = vpop.f32.mrb[2].mxu1 }
 0x177   : > { %1320 = vst [vmem:[%s2259_s19 + $0x8] sm:$0xff] %v936_v5  ;;  %v939_v7 = vpop.f32.mrb[2].mxu0  ;;  %v684_v8 = vpop.f32.mrb[3].mxu1 }
 0x178   : > { %v940_v9 = vadd.f32 %v939_v7, %v682_v6  ;;  %v941_v10 = vpop.f32.mrb[3].mxu0 }
 0x179   : > { %v942_v11 = vadd.f32 %v941_v10, %v684_v8 }
 0x17a   : > { %1321 = vst [vmem:[%s2259_s19 + $0x10] sm:$0xff] %v940_v9  ;;  %v688_v12 = vpop.f32.mrb[4].mxu1 }
 0x17b   : > { %1322 = vst [vmem:[%s2259_s19 + $0x18] sm:$0xff] %v942_v11  ;;  %v945_v13 = vpop.f32.mrb[4].mxu0  ;;  %v690_v14 = vpop.f32.mrb[5].mxu1 }
 0x17c   : > { %v946_v15 = vadd.f32 %v945_v13, %v688_v12  ;;  %v947_v16 = vpop.f32.mrb[5].mxu0 }
 0x17d   : > { %v948_v17 = vadd.f32 %v947_v16, %v690_v14 }
 0x17e   : > { %1323 = vst [vmem:[%s2259_s19 + $0x20] sm:$0xff] %v946_v15  ;;  %v694_v18 = vpop.f32.mrb[6].mxu1 }
 0x17f   : > { %1324 = vst [vmem:[%s2259_s19 + $0x28] sm:$0xff] %v948_v17  ;;  %v951_v19 = vpop.f32.mrb[6].mxu0  ;;  %v696_v20 = vpop.f32.mrb[7].mxu1 }
 0x180   : > { %v952_v21 = vadd.f32 %v951_v19, %v694_v18  ;;  %v953_v22 = vpop.f32.mrb[7].mxu0 }
 0x181   : > { %v954_v23 = vadd.f32 %v953_v22, %v696_v20 }
 0x182   : > { %1325 = vst [vmem:[%s2259_s19 + $0x30] sm:$0xff] %v952_v21  ;;  %v700_v24 = vpop.f32.mrb[8].mxu1 }
 0x183   : > { %1326 = vst [vmem:[%s2259_s19 + $0x38] sm:$0xff] %v954_v23  ;;  %v957_v25 = vpop.f32.mrb[8].mxu0  ;;  %v702_v26 = vpop.f32.mrb[9].mxu1 }
 0x184   : > { %v958_v27 = vadd.f32 %v957_v25, %v700_v24  ;;  %v959_v28 = vpop.f32.mrb[9].mxu0 }
 0x185   : > { %v960_v29 = vadd.f32 %v959_v28, %v702_v26 }
 0x186   : > { %1327 = vst [vmem:[%s2259_s19 + $0x40] sm:$0xff] %v958_v27  ;;  %v706_v30 = vpop.f32.mrb[10].mxu1 }
 0x187   : > { %1328 = vst [vmem:[%s2259_s19 + $0x48] sm:$0xff] %v960_v29  ;;  %v963_v31 = vpop.f32.mrb[10].mxu0  ;;  %v708_v32 = vpop.f32.mrb[11].mxu1 }
 0x188   : > { %v964_v33 = vadd.f32 %v963_v31, %v706_v30  ;;  %v965_v34 = vpop.f32.mrb[11].mxu0 }
 0x189   : > { %v966_v35 = vadd.f32 %v965_v34, %v708_v32 }
 0x18a   : > { %1329 = vst [vmem:[%s2259_s19 + $0x50] sm:$0xff] %v964_v33  ;;  %v712_v36 = vpop.f32.mrb[12].mxu1 }
 0x18b   : > { %1330 = vst [vmem:[%s2259_s19 + $0x58] sm:$0xff] %v966_v35  ;;  %v969_v37 = vpop.f32.mrb[12].mxu0  ;;  %v714_v38 = vpop.f32.mrb[13].mxu1 }
 0x18c   : > { %v970_v39 = vadd.f32 %v969_v37, %v712_v36  ;;  %v971_v40 = vpop.f32.mrb[13].mxu0 }
 0x18d   : > { %v972_v41 = vadd.f32 %v971_v40, %v714_v38 }
 0x18e   : > { %1331 = vst [vmem:[%s2259_s19 + $0x60] sm:$0xff] %v970_v39  ;;  %v718_v42 = vpop.f32.mrb[14].mxu1 }
 0x18f   : > { %1332 = vst [vmem:[%s2259_s19 + $0x68] sm:$0xff] %v972_v41  ;;  %v975_v43 = vpop.f32.mrb[14].mxu0  ;;  %v720_v44 = vpop.f32.mrb[15].mxu1 }
 0x190   : > { %v976_v45 = vadd.f32 %v975_v43, %v718_v42  ;;  %v977_v46 = vpop.f32.mrb[15].mxu0 }
 0x191   : > { %v978_v47 = vadd.f32 %v977_v46, %v720_v44 }
 0x192   : > { %1333 = vst [vmem:[%s2259_s19 + $0x70] sm:$0xff] %v976_v45  ;;  %v724_v48 = vpop.f32.mrb[16].mxu1 }
 0x193   : > { %1334 = vst [vmem:[%s2259_s19 + $0x78] sm:$0xff] %v978_v47  ;;  %v981_v49 = vpop.f32.mrb[16].mxu0  ;;  %v726_v50 = vpop.f32.mrb[17].mxu1 }
 0x194   : > { %v982_v51 = vadd.f32 %v981_v49, %v724_v48  ;;  %v983_v52 = vpop.f32.mrb[17].mxu0 }
 0x195   : > { %v984_v53 = vadd.f32 %v983_v52, %v726_v50 }
 0x196   : > { %1335 = vst [vmem:[%s2259_s19 + $0x80] sm:$0xff] %v982_v51  ;;  %v730_v54 = vpop.f32.mrb[18].mxu1 }
 0x197   : > { %1336 = vst [vmem:[%s2259_s19 + $0x88] sm:$0xff] %v984_v53  ;;  %v987_v55 = vpop.f32.mrb[18].mxu0  ;;  %v732_v56 = vpop.f32.mrb[19].mxu1 }
 0x198   : > { %v988_v57 = vadd.f32 %v987_v55, %v730_v54  ;;  %v989_v58 = vpop.f32.mrb[19].mxu0 }
 0x199   : > { %v990_v59 = vadd.f32 %v989_v58, %v732_v56 }
 0x19a   : > { %1337 = vst [vmem:[%s2259_s19 + $0x90] sm:$0xff] %v988_v57  ;;  %v736_v60 = vpop.f32.mrb[20].mxu1 }
 0x19b   : > { %1338 = vst [vmem:[%s2259_s19 + $0x98] sm:$0xff] %v990_v59  ;;  %v993_v61 = vpop.f32.mrb[20].mxu0  ;;  %v738_v62 = vpop.f32.mrb[21].mxu1 }
 0x19c   : > { %v994_v63 = vadd.f32 %v993_v61, %v736_v60  ;;  %v995_v0 = vpop.f32.mrb[21].mxu0 }
 0x19d   : > { %v996_v1 = vadd.f32 %v995_v0, %v738_v62 }
 0x19e   : > { %1339 = vst [vmem:[%s2259_s19 + $0xa0] sm:$0xff] %v994_v63  ;;  %v742_v2 = vpop.f32.mrb[22].mxu1 }
 0x19f   : > { %1340 = vst [vmem:[%s2259_s19 + $0xa8] sm:$0xff] %v996_v1  ;;  %v999_v3 = vpop.f32.mrb[22].mxu0  ;;  %v744_v4 = vpop.f32.mrb[23].mxu1 }
 0x1a0   : > { %v1000_v5 = vadd.f32 %v999_v3, %v742_v2  ;;  %v1001_v6 = vpop.f32.mrb[23].mxu0 }
 0x1a1   : > { %v1002_v7 = vadd.f32 %v1001_v6, %v744_v4 }
 0x1a2   : > { %1341 = vst [vmem:[%s2259_s19 + $0xb0] sm:$0xff] %v1000_v5  ;;  %v748_v8 = vpop.f32.mrb[24].mxu1 }
 0x1a3   : > { %1342 = vst [vmem:[%s2259_s19 + $0xb8] sm:$0xff] %v1002_v7  ;;  %v1005_v9 = vpop.f32.mrb[24].mxu0  ;;  %v750_v10 = vpop.f32.mrb[25].mxu1 }
 0x1a4   : > { %v1006_v11 = vadd.f32 %v1005_v9, %v748_v8  ;;  %v1007_v12 = vpop.f32.mrb[25].mxu0 }
 0x1a5   : > { %v1008_v13 = vadd.f32 %v1007_v12, %v750_v10 }
 0x1a6   : > { %1343 = vst [vmem:[%s2259_s19 + $0xc0] sm:$0xff] %v1006_v11  ;;  %v754_v14 = vpop.f32.mrb[26].mxu1 }
 0x1a7   : > { %1344 = vst [vmem:[%s2259_s19 + $0xc8] sm:$0xff] %v1008_v13  ;;  %v1011_v15 = vpop.f32.mrb[26].mxu0  ;;  %v756_v16 = vpop.f32.mrb[27].mxu1 }
 0x1a8   : > { %v1012_v17 = vadd.f32 %v1011_v15, %v754_v14  ;;  %v1013_v18 = vpop.f32.mrb[27].mxu0 }
 0x1a9   : > { %v1014_v19 = vadd.f32 %v1013_v18, %v756_v16 }
 0x1aa   : > { %1345 = vst [vmem:[%s2259_s19 + $0xd0] sm:$0xff] %v1012_v17  ;;  %v760_v20 = vpop.f32.mrb[28].mxu1 }
 0x1ab   : > { %1346 = vst [vmem:[%s2259_s19 + $0xd8] sm:$0xff] %v1014_v19  ;;  %v1017_v21 = vpop.f32.mrb[28].mxu0  ;;  %v762_v22 = vpop.f32.mrb[29].mxu1 }
 0x1ac   : > { %v1018_v23 = vadd.f32 %v1017_v21, %v760_v20  ;;  %v1019_v24 = vpop.f32.mrb[29].mxu0 }
 0x1ad   : > { %v1020_v25 = vadd.f32 %v1019_v24, %v762_v22 }
 0x1ae   : > { %1347 = vst [vmem:[%s2259_s19 + $0xe0] sm:$0xff] %v1018_v23  ;;  %v766_v26 = vpop.f32.mrb[30].mxu1 }
 0x1af   : > { %1348 = vst [vmem:[%s2259_s19 + $0xe8] sm:$0xff] %v1020_v25  ;;  %v1023_v27 = vpop.f32.mrb[30].mxu0  ;;  %v768_v28 = vpop.f32.mrb[31].mxu1 }
 0x1b0   : > { %v1024_v29 = vadd.f32 %v1023_v27, %v766_v26  ;;  %v1025_v30 = vpop.f32.mrb[31].mxu0 }
 0x1b1   : > { %v1026_v31 = vadd.f32 %v1025_v30, %v768_v28 }
 0x1b2   : > { %1349 = vst [vmem:[%s2259_s19 + $0xf0] sm:$0xff] %v1024_v29  ;;  %v772_v32 = vpop.f32.mrb[32].mxu1 }
 0x1b3   : > { %1350 = vst [vmem:[%s2259_s19 + $0xf8] sm:$0xff] %v1026_v31  ;;  %v1029_v33 = vpop.f32.mrb[32].mxu0  ;;  %v774_v34 = vpop.f32.mrb[33].mxu1 }
 0x1b4   : > { %v1030_v35 = vadd.f32 %v1029_v33, %v772_v32  ;;  %v1031_v36 = vpop.f32.mrb[33].mxu0 }
 0x1b5   : > { %v1032_v37 = vadd.f32 %v1031_v36, %v774_v34 }
 0x1b6   : > { %1351 = vst [vmem:[%s2259_s19 + $0x100] sm:$0xff] %v1030_v35  ;;  %v778_v38 = vpop.f32.mrb[34].mxu1 }
 0x1b7   : > { %1352 = vst [vmem:[%s2259_s19 + $0x108] sm:$0xff] %v1032_v37  ;;  %v1035_v39 = vpop.f32.mrb[34].mxu0  ;;  %v780_v40 = vpop.f32.mrb[35].mxu1 }
 0x1b8   : > { %v1036_v41 = vadd.f32 %v1035_v39, %v778_v38  ;;  %v1037_v42 = vpop.f32.mrb[35].mxu0 }
 0x1b9   : > { %v1038_v43 = vadd.f32 %v1037_v42, %v780_v40 }
 0x1ba   : > { %1353 = vst [vmem:[%s2259_s19 + $0x110] sm:$0xff] %v1036_v41  ;;  %v784_v44 = vpop.f32.mrb[36].mxu1 }
 0x1bb   : > { %1354 = vst [vmem:[%s2259_s19 + $0x118] sm:$0xff] %v1038_v43  ;;  %v1041_v45 = vpop.f32.mrb[36].mxu0  ;;  %v786_v46 = vpop.f32.mrb[37].mxu1 }
 0x1bc   : > { %v1042_v47 = vadd.f32 %v1041_v45, %v784_v44  ;;  %v1043_v48 = vpop.f32.mrb[37].mxu0 }
 0x1bd   : > { %v1044_v49 = vadd.f32 %v1043_v48, %v786_v46 }
 0x1be   : > { %1355 = vst [vmem:[%s2259_s19 + $0x120] sm:$0xff] %v1042_v47  ;;  %v790_v50 = vpop.f32.mrb[38].mxu1 }
 0x1bf   : > { %1356 = vst [vmem:[%s2259_s19 + $0x128] sm:$0xff] %v1044_v49  ;;  %v1047_v51 = vpop.f32.mrb[38].mxu0  ;;  %v792_v52 = vpop.f32.mrb[39].mxu1 }
 0x1c0   : > { %v1048_v53 = vadd.f32 %v1047_v51, %v790_v50  ;;  %v1049_v54 = vpop.f32.mrb[39].mxu0 }
 0x1c1   : > { %v1050_v55 = vadd.f32 %v1049_v54, %v792_v52 }
 0x1c2   : > { %1357 = vst [vmem:[%s2259_s19 + $0x130] sm:$0xff] %v1048_v53  ;;  %v796_v56 = vpop.f32.mrb[40].mxu1 }
 0x1c3   : > { %1358 = vst [vmem:[%s2259_s19 + $0x138] sm:$0xff] %v1050_v55  ;;  %v1053_v57 = vpop.f32.mrb[40].mxu0  ;;  %v798_v58 = vpop.f32.mrb[41].mxu1 }
 0x1c4   : > { %v1054_v59 = vadd.f32 %v1053_v57, %v796_v56  ;;  %v1055_v60 = vpop.f32.mrb[41].mxu0 }
 0x1c5   : > { %v1056_v61 = vadd.f32 %v1055_v60, %v798_v58 }
 0x1c6   : > { %1359 = vst [vmem:[%s2259_s19 + $0x140] sm:$0xff] %v1054_v59  ;;  %v802_v62 = vpop.f32.mrb[42].mxu1 }
 0x1c7   : > { %1360 = vst [vmem:[%s2259_s19 + $0x148] sm:$0xff] %v1056_v61  ;;  %v1059_v63 = vpop.f32.mrb[42].mxu0  ;;  %v804_v0 = vpop.f32.mrb[43].mxu1 }
 0x1c8   : > { %v1060_v1 = vadd.f32 %v1059_v63, %v802_v62  ;;  %v1061_v2 = vpop.f32.mrb[43].mxu0 }
 0x1c9   : > { %v1062_v3 = vadd.f32 %v1061_v2, %v804_v0 }
 0x1ca   : > { %1361 = vst [vmem:[%s2259_s19 + $0x150] sm:$0xff] %v1060_v1  ;;  %v808_v4 = vpop.f32.mrb[44].mxu1 }
 0x1cb   : > { %1362 = vst [vmem:[%s2259_s19 + $0x158] sm:$0xff] %v1062_v3  ;;  %v1065_v5 = vpop.f32.mrb[44].mxu0  ;;  %v810_v6 = vpop.f32.mrb[45].mxu1 }
 0x1cc   : > { %v1066_v7 = vadd.f32 %v1065_v5, %v808_v4  ;;  %v1067_v8 = vpop.f32.mrb[45].mxu0 }
 0x1cd   : > { %v1068_v9 = vadd.f32 %v1067_v8, %v810_v6 }
 0x1ce   : > { %1363 = vst [vmem:[%s2259_s19 + $0x160] sm:$0xff] %v1066_v7  ;;  %v814_v10 = vpop.f32.mrb[46].mxu1 }
 0x1cf   : > { %1364 = vst [vmem:[%s2259_s19 + $0x168] sm:$0xff] %v1068_v9  ;;  %v1071_v11 = vpop.f32.mrb[46].mxu0  ;;  %v816_v12 = vpop.f32.mrb[47].mxu1 }
 0x1d0   : > { %v1072_v13 = vadd.f32 %v1071_v11, %v814_v10  ;;  %v1073_v14 = vpop.f32.mrb[47].mxu0 }
 0x1d1   : > { %v1074_v15 = vadd.f32 %v1073_v14, %v816_v12 }
 0x1d2   : > { %1365 = vst [vmem:[%s2259_s19 + $0x170] sm:$0xff] %v1072_v13  ;;  %v820_v16 = vpop.f32.mrb[48].mxu1 }
 0x1d3   : > { %1366 = vst [vmem:[%s2259_s19 + $0x178] sm:$0xff] %v1074_v15  ;;  %v1077_v17 = vpop.f32.mrb[48].mxu0  ;;  %v822_v18 = vpop.f32.mrb[49].mxu1 }
 0x1d4   : > { %v1078_v19 = vadd.f32 %v1077_v17, %v820_v16  ;;  %v1079_v20 = vpop.f32.mrb[49].mxu0 }
 0x1d5   : > { %v1080_v21 = vadd.f32 %v1079_v20, %v822_v18 }
 0x1d6   : > { %1367 = vst [vmem:[%s2259_s19 + $0x180] sm:$0xff] %v1078_v19  ;;  %v826_v22 = vpop.f32.mrb[50].mxu1 }
 0x1d7   : > { %1368 = vst [vmem:[%s2259_s19 + $0x188] sm:$0xff] %v1080_v21  ;;  %v1083_v23 = vpop.f32.mrb[50].mxu0  ;;  %v828_v24 = vpop.f32.mrb[51].mxu1 }
 0x1d8   : > { %v1084_v25 = vadd.f32 %v1083_v23, %v826_v22  ;;  %v1085_v26 = vpop.f32.mrb[51].mxu0 }
 0x1d9   : > { %v1086_v27 = vadd.f32 %v1085_v26, %v828_v24 }
 0x1da   : > { %1369 = vst [vmem:[%s2259_s19 + $0x190] sm:$0xff] %v1084_v25  ;;  %v832_v28 = vpop.f32.mrb[52].mxu1 }
 0x1db   : > { %1370 = vst [vmem:[%s2259_s19 + $0x198] sm:$0xff] %v1086_v27  ;;  %v1089_v29 = vpop.f32.mrb[52].mxu0  ;;  %v834_v30 = vpop.f32.mrb[53].mxu1 }
 0x1dc   : > { %v1090_v31 = vadd.f32 %v1089_v29, %v832_v28  ;;  %v1091_v32 = vpop.f32.mrb[53].mxu0 }
 0x1dd   : > { %v1092_v33 = vadd.f32 %v1091_v32, %v834_v30 }
 0x1de   : > { %1371 = vst [vmem:[%s2259_s19 + $0x1a0] sm:$0xff] %v1090_v31  ;;  %v838_v34 = vpop.f32.mrb[54].mxu1 }
 0x1df   : > { %1372 = vst [vmem:[%s2259_s19 + $0x1a8] sm:$0xff] %v1092_v33  ;;  %v1095_v35 = vpop.f32.mrb[54].mxu0  ;;  %v840_v36 = vpop.f32.mrb[55].mxu1 }
 0x1e0   : > { %v1096_v37 = vadd.f32 %v1095_v35, %v838_v34  ;;  %v1097_v38 = vpop.f32.mrb[55].mxu0 }
 0x1e1   : > { %v1098_v39 = vadd.f32 %v1097_v38, %v840_v36 }
 0x1e2   : > { %1373 = vst [vmem:[%s2259_s19 + $0x1b0] sm:$0xff] %v1096_v37  ;;  %v844_v40 = vpop.f32.mrb[56].mxu1 }
 0x1e3   : > { %1374 = vst [vmem:[%s2259_s19 + $0x1b8] sm:$0xff] %v1098_v39  ;;  %v1101_v41 = vpop.f32.mrb[56].mxu0  ;;  %v846_v42 = vpop.f32.mrb[57].mxu1 }
 0x1e4   : > { %v1102_v43 = vadd.f32 %v1101_v41, %v844_v40  ;;  %v1103_v44 = vpop.f32.mrb[57].mxu0 }
 0x1e5   : > { %v1104_v45 = vadd.f32 %v1103_v44, %v846_v42 }
 0x1e6   : > { %1375 = vst [vmem:[%s2259_s19 + $0x1c0] sm:$0xff] %v1102_v43  ;;  %v850_v46 = vpop.f32.mrb[58].mxu1 }
 0x1e7   : > { %1376 = vst [vmem:[%s2259_s19 + $0x1c8] sm:$0xff] %v1104_v45  ;;  %v1107_v47 = vpop.f32.mrb[58].mxu0  ;;  %v852_v48 = vpop.f32.mrb[59].mxu1 }
 0x1e8   : > { %v1108_v49 = vadd.f32 %v1107_v47, %v850_v46  ;;  %v1109_v50 = vpop.f32.mrb[59].mxu0 }
 0x1e9   : > { %v1110_v51 = vadd.f32 %v1109_v50, %v852_v48 }
 0x1ea   : > { %1377 = vst [vmem:[%s2259_s19 + $0x1d0] sm:$0xff] %v1108_v49  ;;  %v856_v52 = vpop.f32.mrb[60].mxu1 }
 0x1eb   : > { %1378 = vst [vmem:[%s2259_s19 + $0x1d8] sm:$0xff] %v1110_v51  ;;  %v1113_v53 = vpop.f32.mrb[60].mxu0  ;;  %v858_v54 = vpop.f32.mrb[61].mxu1 }
 0x1ec   : > { %v1114_v55 = vadd.f32 %v1113_v53, %v856_v52  ;;  %v1115_v56 = vpop.f32.mrb[61].mxu0 }
 0x1ed   : > { %v1116_v57 = vadd.f32 %v1115_v56, %v858_v54 }
 0x1ee   : > { %1379 = vst [vmem:[%s2259_s19 + $0x1e0] sm:$0xff] %v1114_v55  ;;  %v862_v58 = vpop.f32.mrb[62].mxu1 }
 0x1ef   : > { %1380 = vst [vmem:[%s2259_s19 + $0x1e8] sm:$0xff] %v1116_v57  ;;  %v1119_v59 = vpop.f32.mrb[62].mxu0  ;;  %v864_v60 = vpop.f32.mrb[63].mxu1 }
 0x1f0   : > { %v1120_v61 = vadd.f32 %v1119_v59, %v862_v58  ;;  %v1121_v62 = vpop.f32.mrb[63].mxu0 }
 0x1f1   : > { %v1122_v63 = vadd.f32 %v1121_v62, %v864_v60 }
 0x1f2   : > { %1381 = vst [vmem:[%s2259_s19 + $0x1f0] sm:$0xff] %v1120_v61 }
 0x1f3   : > { %1382 = vst [vmem:[%s2259_s19 + $0x1f8] sm:$0xff] %v1122_v63 }
 0x1f4   : > { %1870 = shalt.err (!%p1867_p6)
}
 0x1f5   : > { %s1871_s24 = scalar_lea.hbm %s2328_s8, 8192  ;;  %s1875_s30 = scalar_lea.hbm %s2382_s2, 32768 }
 0x1f6   : > { %p1872_p12 = scmp.ne.s32.totalorder %s2328_s8, %s1871_s24  ;;  %p1876_p10 = scmp.lt.u32.totalorder %s2328_s8, %s2382_s2 }
 0x1f7   : > { %p1877_p1 = scmp.lt.u32.totalorder %s1875_s30, %s1871_s24  ;;  %p1879_p9 = scmp.lt.u32.totalorder %s1871_s24, %s2328_s8 }
 0x1f8   : > { %p1873_p2 = pnand %p1872_p12, %p2401_p11 }
 0x1f9   : > { %p1878_p8 = por %p1877_p1, %p1876_p10 }
 0x1fa   : > { %p1874_p7 = pneg %p1873_p2 }
 0x1fb   : > { %p1880_p4 = por %p1879_p9, %p1878_p8 }
 0x1fd   : > { %p1881_p13 = pnand %p1880_p4, %p1874_p7 }
 0x1ff   : > { %1884 = shalt.err (!%p1881_p13)
}
 0x200   : > { %s1953_s17 = smov 256   ;;  %s1954_s19 = smov 1024  }
 0x201   : > { %s1955_s22 = smov 16  }
 0x202   : > { %1724 = dma.vmem_to_hbm [thread:$0]  (%p2401_p11), %s2330_s26, 8192, %s2328_s8, %s1384_s12, %s1953_s17, %s1954_s19, %s1955_s22  }
 0x203 PF: > { %p1741_p0 = scmp.ge.s32.totalorder %s1943_s14, 2  ;;  %s1415_s25 = sand.u32 1, %s1923_s9  }
 0x204   : > { %p2402_p5 = scmp.ne.s32.totalorder %s2393_s21, 0  ;;  %s1416_s6 = scalar_lea.sflag [#allocation5], %s1415_s25 }
 0x206   : > { %p1735_p3 = pnand %p1741_p0, %p2402_p5 }
 0x208   : > { %1918 = dma.done.wait (!%p1735_p3), %s1416_s6, 8192  }
 0x209   : > { %1920 = vsyncadd (!%p1735_p3), %s1416_s6, 4294959104  ;;  %s19_s14 = sadd.s32 1, %s1943_s14   ;;  %s2403_s9 = smov %s1927_s10 }
 0x20a   : > { %p16_p6 = scmp.ge.s32.totalorder %s19_s14, 6   ;;  %s2404_s10 = smov %s1931_s11 }
 0x20b   : > { %s2405_s11 = smov %s2081_s7  ;;  %s2406_s12 = smov %s1939_s13 }
 0x20c   : > { %s2407_s13 = smov %s2409_s27  ;;  %18 = sbr.rel (!%p16_p6) target bundleno = 7 (0x7), region = 87 }
 0x213   :  { %1421 = vsyncpa [#allocation4], 1 }
 0x214   :  { %1423 = vsyncpa [#allocation4 + $0x1], 1 }
 0x215   :  { %1424 = vsyncpa [#allocation7], 1 }
 0x216   :  { %1426 = vsyncpa [#allocation7 + $0x1], 1 }
 0x217   :  { %1427 = vsyncpa [#allocation5], 1 }
 0x218   :  { %1429 = vsyncpa [#allocation5 + $0x1], 1 }

</bundles_post_ra>
